<compile_context>
chip_gen: v5e
topology: v5e:2x2
jax: 0.10.0
libtpu: 0.0.40
codegen_flags: <defaults>
</compile_context>

<pallas_src>
import math
from functools import partial

import jax
import jax.numpy as jnp
from jax import lax
from jax.experimental import pallas as pl
from jax.experimental.pallas import tpu as pltpu

# ----------------------------- global knobs ---------------------------------
MM_DTYPE = jnp.bfloat16          # MXU input dtype (accumulation is always f32)
_LN_EPS = 1e-5                   # nn.LayerNorm default
_INV_SQRT2 = 0.7071067811865476
_VMEM_LIMIT = 48 * 1024 * 1024   # scoped-VMEM cap with headroom on v7x (64 MiB)
_BLOCK_M = 256                   # row tile for the fused linears
_BLOCK_N = 512                   # lane tile for the fused linears


def _round_up(n, m):
    return ((n + m - 1) // m) * m


def _erf(x):
    # Abramowitz & Stegun 7.1.26 rational approximation (max abs err ~1.5e-7).
    # Matches exact-erf nn.GELU to f32 precision without relying on a Mosaic
    # lowering for lax.erf (only exp / mul / add / div / select are used).
    ax = jnp.abs(x)
    t = 1.0 / (1.0 + 0.3275911 * ax)
    poly = ((((1.061405429 * t - 1.453152027) * t + 1.421413741) * t
             - 0.284496736) * t + 0.254829592) * t
    y = 1.0 - poly * jnp.exp(-(ax * ax))
    return jnp.where(x < 0.0, -y, y)


def _gelu(x):
    return 0.5 * x * (1.0 + _erf(x * _INV_SQRT2))


# ----------------------- fused tiled matmul kernel ---------------------------

def _make_mm_kernel(has_ln, has_bias, has_res, act):
    def kernel(*refs):
        it = iter(refs)
        x_ref = next(it)
        lnw_ref = next(it) if has_ln else None
        lnb_ref = next(it) if has_ln else None
        w_ref = next(it)
        b_ref = next(it) if has_bias else None
        r_ref = next(it) if has_res else None
        o_ref = next(it)

        x = x_ref[...].astype(jnp.float32)
        if has_ln:                                     # LayerNorm prologue (f32)
            mu = jnp.mean(x, axis=-1, keepdims=True)
            var = jnp.mean(jnp.square(x - mu), axis=-1, keepdims=True)
            x = (x - mu) * lax.rsqrt(var + _LN_EPS)
            x = x * lnw_ref[...].astype(jnp.float32) + lnb_ref[...].astype(jnp.float32)
        y = jnp.dot(x.astype(MM_DTYPE), w_ref[...].astype(MM_DTYPE),
                    preferred_element_type=jnp.float32)
        if has_bias:
            y = y + b_ref[...].astype(jnp.float32)
        if act == "gelu":                              # GELU epilogue (f32)
            y = _gelu(y)
        if has_res:
            y = y + r_ref[...].astype(jnp.float32)
        o_ref[...] = y.astype(o_ref.dtype)
    return kernel


def fused_matmul(x, w, b=None, *, ln=None, residual=None, act=None,
                 block_m=_BLOCK_M, block_n=_BLOCK_N):
    """y = [LN(x)] @ w (+ b) [-> GELU] (+ residual).

    x: (M, K) f32, w: (K, N).  The output N axis is padded to a multiple of 128
    so the kernel always issues lane-dense (unmasked) stores; the pad is sliced
    off before returning.  K stays resident (K = D or 4D).
    """
    M, K = x.shape
    N = w.shape[1]
    n_pad = _round_up(N, 128)
    if n_pad != N:
        w = jnp.pad(w, ((0, 0), (0, n_pad - N)))
        if b is not None:
            b = jnp.pad(b, (0, n_pad - N))
        if residual is not None:
            residual = jnp.pad(residual, ((0, 0), (0, n_pad - N)))

    tm = M if M <= block_m else block_m          # block_m is a multiple of 8
    tn = n_pad if n_pad <= block_n else block_n  # always a multiple of 128
    grid = (pl.cdiv(M, tm), pl.cdiv(n_pad, tn))

    in_specs = [pl.BlockSpec((tm, K), lambda i, j: (i, 0))]
    args = [x]
    if ln is not None:
        ln_w, ln_b = ln
        in_specs += [pl.BlockSpec((1, K), lambda i, j: (0, 0)),
                     pl.BlockSpec((1, K), lambda i, j: (0, 0))]
        args += [ln_w.reshape(1, K), ln_b.reshape(1, K)]
    in_specs.append(pl.BlockSpec((K, tn), lambda i, j: (0, j)))
    args.append(w)
    if b is not None:
        in_specs.append(pl.BlockSpec((1, tn), lambda i, j: (0, j)))
        args.append(b.reshape(1, n_pad))
    if residual is not None:
        in_specs.append(pl.BlockSpec((tm, tn), lambda i, j: (i, j)))
        args.append(residual)

    kernel = _make_mm_kernel(ln is not None, b is not None,
                             residual is not None, act)
    bytes_accessed = 4 * (M * K + K * n_pad + M * n_pad
                          + (M * n_pad if residual is not None else 0))
    out = pl.pallas_call(
        kernel,
        out_shape=jax.ShapeDtypeStruct((M, n_pad), jnp.float32),
        grid=grid,
        in_specs=in_specs,
        out_specs=pl.BlockSpec((tm, tn), lambda i, j: (i, j)),
        compiler_params=pltpu.CompilerParams(
            dimension_semantics=("parallel", "parallel"),
            vmem_limit_bytes=_VMEM_LIMIT),
        cost_estimate=pl.CostEstimate(
            flops=2 * M * K * n_pad,
            transcendentals=(M * n_pad if act == "gelu" else 0),
            bytes_accessed=bytes_accessed),
    )(*args)
    if n_pad != N:
        out = out[:, :N]
    return out


# --------------------------- attention kernels -------------------------------

def _attn_heads(q2d, k2d, v2d, *, num_heads, scale):
    """Multi-head attention on VMEM-resident slabs.

    q2d (Nq, D), k2d/v2d (Nk, D), heads packed along lanes.  Heads are a static
    unrolled loop; per-head outputs are concatenated back along lanes so the
    caller writes one lane-dense (Nq, D) tile (no masked partial stores).
    """
    Nq, D = q2d.shape
    Dh = D // num_heads
    outs = []
    for h in range(num_heads):
        sl = slice(h * Dh, (h + 1) * Dh)
        q = (q2d[:, sl].astype(jnp.float32) * scale).astype(MM_DTYPE)  # scale folded into q
        k = k2d[:, sl].astype(MM_DTYPE)
        v = v2d[:, sl].astype(MM_DTYPE)
        # q @ k^T: contract the Dh axes on the MXU, no explicit transpose.
        s = lax.dot_general(q, k, (((1,), (1,)), ((), ())),
                            preferred_element_type=jnp.float32)
        s = s - jnp.max(s, axis=-1, keepdims=True)
        p = jnp.exp(s)
        inv_l = pl.reciprocal(jnp.sum(p, axis=-1, keepdims=True), approx=True)
        o = jnp.dot(p.astype(MM_DTYPE), v, preferred_element_type=jnp.float32)
        outs.append(o * inv_l)                 # 1/l folded into the (Nq, Dh) output
    return jnp.concatenate(outs, axis=-1)


def _self_attn_kernel(qkv_ref, o_ref, *, num_heads, scale):
    qkv = qkv_ref[0]                            # (N, 3D) packed q|k|v
    D = qkv.shape[-1] // 3
    o = _attn_heads(qkv[:, :D], qkv[:, D:2 * D], qkv[:, 2 * D:],
                    num_heads=num_heads, scale=scale)
    o_ref[0] = o.astype(o_ref.dtype)


def _cross_attn_kernel(q_ref, kv_ref, o_ref, *, num_heads, scale):
    q = q_ref[0]                                # (Nq, D)
    kv = kv_ref[0]                              # (Nk, 2D) packed k|v
    D = q.shape[-1]
    o = _attn_heads(q, kv[:, :D], kv[:, D:], num_heads=num_heads, scale=scale)
    o_ref[0] = o.astype(o_ref.dtype)


# TODO(synk): for very long sequences (e.g. N~1568 on v7x's 64 MiB VMEM) switch
# to a flash-style online-softmax KV-tile loop instead of full (N, N) scores.
def self_attention_core(qkv, num_heads):
    """qkv (B, N, 3D) -> attention output (B, N, D), one grid step per batch."""
    B, N, D3 = qkv.shape
    D = D3 // 3
    scale = (D // num_heads) ** -0.5
    return pl.pallas_call(
        partial(_self_attn_kernel, num_heads=num_heads, scale=scale),
        out_shape=jax.ShapeDtypeStruct((B, N, D), jnp.float32),
        grid=(B,),
        in_specs=[pl.BlockSpec((1, N, D3), lambda b: (b, 0, 0))],
        out_specs=pl.BlockSpec((1, N, D), lambda b: (b, 0, 0)),
        compiler_params=pltpu.CompilerParams(
            dimension_semantics=("parallel",),
            vmem_limit_bytes=_VMEM_LIMIT),
    )(qkv)


def cross_attention_core(q, kv, num_heads):
    """q (B, Nq, D), kv (B, Nk, 2D) -> (B, Nq, D)."""
    B, Nq, D = q.shape
    Nk = kv.shape[1]
    scale = (D // num_heads) ** -0.5
    return pl.pallas_call(
        partial(_cross_attn_kernel, num_heads=num_heads, scale=scale),
        out_shape=jax.ShapeDtypeStruct((B, Nq, D), jnp.float32),
        grid=(B,),
        in_specs=[pl.BlockSpec((1, Nq, D), lambda b: (b, 0, 0)),
                  pl.BlockSpec((1, Nk, 2 * D), lambda b: (b, 0, 0))],
        out_specs=pl.BlockSpec((1, Nq, D), lambda b: (b, 0, 0)),
        compiler_params=pltpu.CompilerParams(
            dimension_semantics=("parallel",),
            vmem_limit_bytes=_VMEM_LIMIT),
    )(q, kv)


# --------------------------- transformer blocks ------------------------------

def block_forward(x, p, num_heads):
    B, N, D = x.shape
    xf = x.reshape(B * N, D)
    # LN1 fused into the QKV projection; packed qkv goes straight to attention.
    qkv = fused_matmul(xf, p["attn"]["qkv_w"],
                       ln=(p["norm1"]["w"], p["norm1"]["b"]))
    a = self_attention_core(qkv.reshape(B, N, 3 * D), num_heads)
    xf = fused_matmul(a.reshape(B * N, D), p["attn"]["proj_w"],
                      p["attn"]["proj_b"], residual=xf)
    # LN2 + GELU fused into fc1; residual fused into fc2.
    h = fused_matmul(xf, p["mlp"]["fc1_w"], p["mlp"]["fc1_b"],
                     ln=(p["norm2"]["w"], p["norm2"]["b"]), act="gelu")
    xf = fused_matmul(h, p["mlp"]["fc2_w"], p["mlp"]["fc2_b"], residual=xf)
    return xf.reshape(B, N, D)


def csblock_forward(x, ctx, p, num_heads):
    B, N, D = x.shape
    Bc, M, Dc = ctx.shape
    xf = x.reshape(B * N, D)
    cf = ctx.reshape(Bc * M, Dc)
    # cross_norm1 fused into the q projection, cross_norm2 into the packed k|v.
    q = fused_matmul(xf, p["cross_attn"]["q_w"],
                     ln=(p["cross_norm1"]["w"], p["cross_norm1"]["b"]))
    kv = fused_matmul(cf, p["cross_attn"]["kv_w"],
                      ln=(p["cross_norm2"]["w"], p["cross_norm2"]["b"]))
    a = cross_attention_core(q.reshape(B, N, D), kv.reshape(Bc, M, 2 * D), num_heads)
    xf = fused_matmul(a.reshape(B * N, D), p["cross_attn"]["proj_w"],
                      p["cross_attn"]["proj_b"], residual=xf)
    # self-attention
    qkv = fused_matmul(xf, p["attn"]["qkv_w"],
                       ln=(p["norm1"]["w"], p["norm1"]["b"]))
    a = self_attention_core(qkv.reshape(B, N, 3 * D), num_heads)
    xf = fused_matmul(a.reshape(B * N, D), p["attn"]["proj_w"],
                      p["attn"]["proj_b"], residual=xf)
    # MLP
    h = fused_matmul(xf, p["mlp"]["fc1_w"], p["mlp"]["fc1_b"],
                     ln=(p["norm2"]["w"], p["norm2"]["b"]), act="gelu")
    xf = fused_matmul(h, p["mlp"]["fc2_w"], p["mlp"]["fc2_b"], residual=xf)
    return xf.reshape(B, N, D)


def decoder_forward(params, x, x_skip_connects, *, return_token_num, num_heads):
    for i, bp in enumerate(params["blocks"]):
        if i == 0:
            x = block_forward(x, bp, num_heads)
        else:
            x = csblock_forward(x, x_skip_connects[-i], bp, num_heads)
    if return_token_num > 0:
        x = x[:, -return_token_num:]
    B, N, D = x.shape
    # Final LayerNorm fused into the classification head.  The head output is
    # written as a lane-dense 128-multiple tile and sliced back to num_classes.
    out = fused_matmul(x.reshape(B * N, D), params["head_w"], params["head_b"],
                       ln=(params["norm"]["w"], params["norm"]["b"]))
    return out.reshape(B, N, -1)


# -------- deterministic parameter init (matches _init_weights) --------------

def xavier_uniform(key, fan_in, fan_out):
    a = math.sqrt(6.0 / (fan_in + fan_out))
    return jax.random.uniform(key, (fan_in, fan_out), jnp.float32, -a, a)


def init_ln(dim):
    return {"w": jnp.ones((dim,), jnp.float32), "b": jnp.zeros((dim,), jnp.float32)}


def init_attn(key, dim):
    # qkv_bias=False (module default) -> no qkv bias.
    k1, k2 = jax.random.split(key)
    return {"qkv_w": xavier_uniform(k1, dim, 3 * dim),
            "proj_w": xavier_uniform(k2, dim, dim),
            "proj_b": jnp.zeros((dim,), jnp.float32)}


def init_cross_attn(key, dim, ctx_dim):
    kq, kk, kv, kp = jax.random.split(key, 4)
    k_w = xavier_uniform(kk, ctx_dim, dim)
    v_w = xavier_uniform(kv, ctx_dim, dim)
    return {"q_w": xavier_uniform(kq, dim, dim),
            "kv_w": jnp.concatenate([k_w, v_w], axis=1),   # packed k|v projection
            "proj_w": xavier_uniform(kp, dim, dim),
            "proj_b": jnp.zeros((dim,), jnp.float32)}


def init_mlp(key, dim, hidden):
    k1, k2 = jax.random.split(key)
    return {"fc1_w": xavier_uniform(k1, dim, hidden),
            "fc1_b": jnp.zeros((hidden,), jnp.float32),
            "fc2_w": xavier_uniform(k2, hidden, dim),
            "fc2_b": jnp.zeros((dim,), jnp.float32)}


def init_decoder(key, *, embed_dim, depth, mlp_ratio, num_classes):
    hidden = int(embed_dim * mlp_ratio)
    keys = jax.random.split(key, depth + 1)
    blocks = []
    for i in range(depth):
        bk = jax.random.split(keys[i], 3)
        blk = {"norm1": init_ln(embed_dim),
               "attn": init_attn(bk[0], embed_dim),
               "norm2": init_ln(embed_dim),
               "mlp": init_mlp(bk[1], embed_dim, hidden)}
        if i > 0:  # CSBlock extras
            blk.update({"cross_norm1": init_ln(embed_dim),
                        "cross_norm2": init_ln(embed_dim),
                        "cross_attn": init_cross_attn(bk[2], embed_dim, embed_dim)})
        blocks.append(blk)
    return {"blocks": blocks,
            "norm": init_ln(embed_dim),
            "head_w": xavier_uniform(keys[depth], embed_dim, num_classes),
            "head_b": jnp.zeros((num_classes,), jnp.float32)}


if __name__ == "__main__":
    # Small decoder config consistent with the module's constraints.
    patch_size = 2
    tubelet_size = 2
    num_classes = 3 * tubelet_size * patch_size ** 2      # == 24, matches assert
    assert num_classes == 3 * tubelet_size * patch_size ** 2
    embed_dim = 32
    depth = 3
    num_heads = 4
    mlp_ratio = 4.0
    B, N = 2, 8
    return_token_num = 4

    key = jax.random.PRNGKey(0)
    kp, kx, ks = jax.random.split(key, 3)
    params = init_decoder(kp, embed_dim=embed_dim, depth=depth,
                          mlp_ratio=mlp_ratio, num_classes=num_classes)
    x = jax.random.normal(kx, (B, N, embed_dim), jnp.float32)
    skip_keys = jax.random.split(ks, depth - 1)
    x_skip_connects = [jax.random.normal(k, (B, N, embed_dim), jnp.float32)
                       for k in skip_keys]

    fwd = jax.jit(partial(decoder_forward, num_heads=num_heads,
                          return_token_num=return_token_num))
    out = jax.block_until_ready(fwd(params, x, x_skip_connects))
    assert out.shape == (B, return_token_num, num_classes), out.shape
    print("KERNEL_OK")
</pallas_src>

<mosaic_0001>
module attributes {stable_mosaic.version = 11 : i64} {
  func.func @kernel(%arg0: i32, %arg1: i32, %arg2: memref<16x32xf32, #tpu.memory_space<vmem>>, %arg3: memref<1x32xf32, #tpu.memory_space<vmem>>, %arg4: memref<1x32xf32, #tpu.memory_space<vmem>>, %arg5: memref<32x128xf32, #tpu.memory_space<vmem>>, %arg6: memref<16x128xf32, #tpu.memory_space<vmem>>) attributes {dimension_semantics = [#tpu.dimension_semantics<parallel>, #tpu.dimension_semantics<parallel>], iteration_bounds = array<i64: 1, 1>, scalar_prefetch = 0 : i64, scratch_operands = 0 : i64, tpu.core_type = #tpu.core_type<tc>, window_params = [{transform_indices = @transform_0, window_bounds = array<i64: 16, 32>}, {pipeline_mode = #tpu.pipeline_mode<synchronous>, transform_indices = @transform_1, window_bounds = array<i64: 1, 32>}, {pipeline_mode = #tpu.pipeline_mode<synchronous>, transform_indices = @transform_2, window_bounds = array<i64: 1, 32>}, {transform_indices = @transform_3, window_bounds = array<i64: 32, 128>}, {transform_indices = @transform_4, window_bounds = array<i64: 16, 128>}]} {
    %c0 = arith.constant 0 : index
    %c0_0 = arith.constant 0 : index
    %0 = vector.load %arg2[%c0, %c0_0] : memref<16x32xf32, #tpu.memory_space<vmem>>, vector<16x32xf32>
    %cst = arith.constant dense<0.000000e+00> : vector<16xf32>
    %1 = vector.multi_reduction <add>, %0, %cst [1] : vector<16x32xf32> to vector<16xf32>
    %2 = vector.shape_cast %1 : vector<16xf32> to vector<16x1xf32>
    %cst_1 = arith.constant 3.200000e+01 : f32
    %3 = vector.broadcast %cst_1 : f32 to vector<16x1xf32>
    %4 = arith.divf %2, %3 : vector<16x1xf32>
    %5 = vector.broadcast %4 : vector<16x1xf32> to vector<16x32xf32>
    %6 = arith.subf %0, %5 : vector<16x32xf32>
    %7 = arith.mulf %6, %6 : vector<16x32xf32>
    %cst_2 = arith.constant dense<0.000000e+00> : vector<16xf32>
    %8 = vector.multi_reduction <add>, %7, %cst_2 [1] : vector<16x32xf32> to vector<16xf32>
    %9 = vector.shape_cast %8 : vector<16xf32> to vector<16x1xf32>
    %cst_3 = arith.constant 3.200000e+01 : f32
    %10 = vector.broadcast %cst_3 : f32 to vector<16x1xf32>
    %11 = arith.divf %9, %10 : vector<16x1xf32>
    %12 = vector.broadcast %4 : vector<16x1xf32> to vector<16x32xf32>
    %13 = arith.subf %0, %12 : vector<16x32xf32>
    %cst_4 = arith.constant 9.99999974E-6 : f32
    %14 = vector.broadcast %cst_4 : f32 to vector<16x1xf32>
    %15 = arith.addf %11, %14 : vector<16x1xf32>
    %16 = math.rsqrt %15 : vector<16x1xf32>
    %17 = vector.broadcast %16 : vector<16x1xf32> to vector<16x32xf32>
    %18 = arith.mulf %13, %17 : vector<16x32xf32>
    %c0_5 = arith.constant 0 : index
    %c0_6 = arith.constant 0 : index
    %19 = vector.load %arg3[%c0_5, %c0_6] : memref<1x32xf32, #tpu.memory_space<vmem>>, vector<1x32xf32>
    %20 = vector.broadcast %19 : vector<1x32xf32> to vector<16x32xf32>
    %21 = arith.mulf %18, %20 : vector<16x32xf32>
    %c0_7 = arith.constant 0 : index
    %c0_8 = arith.constant 0 : index
    %22 = vector.load %arg4[%c0_7, %c0_8] : memref<1x32xf32, #tpu.memory_space<vmem>>, vector<1x32xf32>
    %23 = vector.broadcast %22 : vector<1x32xf32> to vector<16x32xf32>
    %24 = arith.addf %21, %23 : vector<16x32xf32>
    %25 = arith.truncf %24 : vector<16x32xf32> to vector<16x32xbf16>
    %c0_9 = arith.constant 0 : index
    %c0_10 = arith.constant 0 : index
    %26 = vector.load %arg5[%c0_9, %c0_10] : memref<32x128xf32, #tpu.memory_space<vmem>>, vector<32x128xf32>
    %27 = arith.truncf %26 : vector<32x128xf32> to vector<32x128xbf16>
    %cst_11 = arith.constant dense<0.000000e+00> : vector<16x128xf32>
    %28 = tpu.matmul %25, %27, %cst_11 {dimension_numbers = #tpu.dot_dimension_numbers<[1], [0], [0], [1], [0, 0, 1, 1], [], []>} : vector<16x32xbf16>, vector<32x128xbf16>, vector<16x128xf32> -> vector<16x128xf32>
    %c0_12 = arith.constant 0 : index
    %c0_13 = arith.constant 0 : index
    %29 = vector.load %arg6[%c0_12, %c0_13] : memref<16x128xf32, #tpu.memory_space<vmem>>, vector<16x128xf32>
    tpu.vector_store %arg6[%c0_12, %c0_13], %28 {strides = array<i32>} : memref<16x128xf32, #tpu.memory_space<vmem>>, vector<16x128xf32>,
    return
  }
  func.func @transform_0(%arg0: i32, %arg1: i32) -> (i32, i32) {
    %c0_i32 = arith.constant 0 : i32
    %c0_i32_0 = arith.constant 0 : i32
    return %arg0, %c0_i32 : i32, i32
  }
  func.func @transform_1(%arg0: i32, %arg1: i32) -> (i32, i32) {
    %c0_i32 = arith.constant 0 : i32
    %c0_i32_0 = arith.constant 0 : i32
    %c0_i32_1 = arith.constant 0 : i32
    return %c0_i32, %c0_i32_0 : i32, i32
  }
  func.func @transform_2(%arg0: i32, %arg1: i32) -> (i32, i32) {
    %c0_i32 = arith.constant 0 : i32
    %c0_i32_0 = arith.constant 0 : i32
    %c0_i32_1 = arith.constant 0 : i32
    return %c0_i32, %c0_i32_0 : i32, i32
  }
  func.func @transform_3(%arg0: i32, %arg1: i32) -> (i32, i32) {
    %c0_i32 = arith.constant 0 : i32
    %c0_i32_0 = arith.constant 0 : i32
    return %c0_i32, %arg1 : i32, i32
  }
  func.func @transform_4(%arg0: i32, %arg1: i32) -> (i32, i32) {
    %c0_i32 = arith.constant 0 : i32
    return %arg0, %arg1 : i32, i32
  }
}

module attributes {stable_mosaic.version = 11 : i64} {
  func.func @_self_attn_kernel(%arg0: i32, %arg1: memref<1x8x96xf32, #tpu.memory_space<vmem>>, %arg2: memref<1x8x32xf32, #tpu.memory_space<vmem>>) attributes {dimension_semantics = [#tpu.dimension_semantics<parallel>], iteration_bounds = array<i64: 2>, scalar_prefetch = 0 : i64, scratch_operands = 0 : i64, tpu.core_type = #tpu.core_type<tc>, window_params = [{transform_indices = @transform_0, window_bounds = array<i64: 1, 8, 96>}, {transform_indices = @transform_1, window_bounds = array<i64: 1, 8, 32>}]} {
    %c0 = arith.constant 0 : index
    %c0_0 = arith.constant 0 : index
    %c0_1 = arith.constant 0 : index
    %0 = vector.load %arg1[%c0, %c0_0, %c0_1] : memref<1x8x96xf32, #tpu.memory_space<vmem>>, vector<1x8x96xf32>
    %1 = vector.shape_cast %0 : vector<1x8x96xf32> to vector<8x96xf32>
    %2 = vector.extract_strided_slice %1 {offsets = [0, 0], sizes = [8, 32], strides = [1, 1]} : vector<8x96xf32> to vector<8x32xf32>
    %3 = vector.extract_strided_slice %1 {offsets = [0, 32], sizes = [8, 32], strides = [1, 1]} : vector<8x96xf32> to vector<8x32xf32>
    %4 = vector.extract_strided_slice %1 {offsets = [0, 64], sizes = [8, 32], strides = [1, 1]} : vector<8x96xf32> to vector<8x32xf32>
    %5 = vector.extract_strided_slice %2 {offsets = [0, 0], sizes = [8, 8], strides = [1, 1]} : vector<8x32xf32> to vector<8x8xf32>
    %cst = arith.constant 0.353553385 : f32
    %6 = vector.broadcast %cst : f32 to vector<8x8xf32>
    %7 = arith.mulf %5, %6 : vector<8x8xf32>
    %8 = arith.truncf %7 : vector<8x8xf32> to vector<8x8xbf16>
    %9 = vector.extract_strided_slice %3 {offsets = [0, 0], sizes = [8, 8], strides = [1, 1]} : vector<8x32xf32> to vector<8x8xf32>
    %10 = arith.truncf %9 : vector<8x8xf32> to vector<8x8xbf16>
    %11 = vector.extract_strided_slice %4 {offsets = [0, 0], sizes = [8, 8], strides = [1, 1]} : vector<8x32xf32> to vector<8x8xf32>
    %12 = arith.truncf %11 : vector<8x8xf32> to vector<8x8xbf16>
    %cst_2 = arith.constant dense<0.000000e+00> : vector<8x8xf32>
    %13 = tpu.matmul %8, %10, %cst_2 {dimension_numbers = #tpu.dot_dimension_numbers<[1], [1], [0], [0], [0, 0, 1, 0], [], []>} : vector<8x8xbf16>, vector<8x8xbf16>, vector<8x8xf32> -> vector<8x8xf32>
    %cst_3 = arith.constant dense<0xFF800000> : vector<8xf32>
    %14 = vector.multi_reduction <maximumf>, %13, %cst_3 [1] : vector<8x8xf32> to vector<8xf32>
    %15 = vector.shape_cast %14 : vector<8xf32> to vector<8x1xf32>
    %16 = vector.broadcast %15 : vector<8x1xf32> to vector<8x8xf32>
    %17 = arith.subf %13, %16 : vector<8x8xf32>
    %18 = math.exp %17 : vector<8x8xf32>
    %cst_4 = arith.constant dense<0.000000e+00> : vector<8xf32>
    %19 = vector.multi_reduction <add>, %18, %cst_4 [1] : vector<8x8xf32> to vector<8xf32>
    %20 = vector.shape_cast %19 : vector<8xf32> to vector<8x1xf32>
    %21 = tpu.reciprocal %20 {approx = true} : vector<8x1xf32> -> vector<8x1xf32>
    %22 = arith.truncf %18 : vector<8x8xf32> to vector<8x8xbf16>
    %cst_5 = arith.constant dense<0.000000e+00> : vector<8x8xf32>
    %23 = tpu.matmul %22, %12, %cst_5 {dimension_numbers = #tpu.dot_dimension_numbers<[1], [0], [0], [1], [0, 0, 1, 1], [], []>} : vector<8x8xbf16>, vector<8x8xbf16>, vector<8x8xf32> -> vector<8x8xf32>
    %24 = vector.broadcast %21 : vector<8x1xf32> to vector<8x8xf32>
    %25 = arith.mulf %23, %24 : vector<8x8xf32>
    %26 = vector.extract_strided_slice %2 {offsets = [0, 8], sizes = [8, 8], strides = [1, 1]} : vector<8x32xf32> to vector<8x8xf32>
    %cst_6 = arith.constant 0.353553385 : f32
    %27 = vector.broadcast %cst_6 : f32 to vector<8x8xf32>
    %28 = arith.mulf %26, %27 : vector<8x8xf32>
    %29 = arith.truncf %28 : vector<8x8xf32> to vector<8x8xbf16>
    %30 = vector.extract_strided_slice %3 {offsets = [0, 8], sizes = [8, 8], strides = [1, 1]} : vector<8x32xf32> to vector<8x8xf32>
    %31 = arith.truncf %30 : vector<8x8xf32> to vector<8x8xbf16>
    %32 = vector.extract_strided_slice %4 {offsets = [0, 8], sizes = [8, 8], strides = [1, 1]} : vector<8x32xf32> to vector<8x8xf32>
    %33 = arith.truncf %32 : vector<8x8xf32> to vector<8x8xbf16>
    %cst_7 = arith.constant dense<0.000000e+00> : vector<8x8xf32>
    %34 = tpu.matmul %29, %31, %cst_7 {dimension_numbers = #tpu.dot_dimension_numbers<[1], [1], [0], [0], [0, 0, 1, 0], [], []>} : vector<8x8xbf16>, vector<8x8xbf16>, vector<8x8xf32> -> vector<8x8xf32>
    %cst_8 = arith.constant dense<0xFF800000> : vector<8xf32>
    %35 = vector.multi_reduction <maximumf>, %34, %cst_8 [1] : vector<8x8xf32> to vector<8xf32>
    %36 = vector.shape_cast %35 : vector<8xf32> to vector<8x1xf32>
    %37 = vector.broadcast %36 : vector<8x1xf32> to vector<8x8xf32>
    %38 = arith.subf %34, %37 : vector<8x8xf32>
    %39 = math.exp %38 : vector<8x8xf32>
    %cst_9 = arith.constant dense<0.000000e+00> : vector<8xf32>
    %40 = vector.multi_reduction <add>, %39, %cst_9 [1] : vector<8x8xf32> to vector<8xf32>
    %41 = vector.shape_cast %40 : vector<8xf32> to vector<8x1xf32>
    %42 = tpu.reciprocal %41 {approx = true} : vector<8x1xf32> -> vector<8x1xf32>
    %43 = arith.truncf %39 : vector<8x8xf32> to vector<8x8xbf16>
    %cst_10 = arith.constant dense<0.000000e+00> : vector<8x8xf32>
    %44 = tpu.matmul %43, %33, %cst_10 {dimension_numbers = #tpu.dot_dimension_numbers<[1], [0], [0], [1], [0, 0, 1, 1], [], []>} : vector<8x8xbf16>, vector<8x8xbf16>, vector<8x8xf32> -> vector<8x8xf32>
    %45 = vector.broadcast %42 : vector<8x1xf32> to vector<8x8xf32>
    %46 = arith.mulf %44, %45 : vector<8x8xf32>
    %47 = vector.extract_strided_slice %2 {offsets = [0, 16], sizes = [8, 8], strides = [1, 1]} : vector<8x32xf32> to vector<8x8xf32>
    %cst_11 = arith.constant 0.353553385 : f32
    %48 = vector.broadcast %cst_11 : f32 to vector<8x8xf32>
    %49 = arith.mulf %47, %48 : vector<8x8xf32>
    %50 = arith.truncf %49 : vector<8x8xf32> to vector<8x8xbf16>
    %51 = vector.extract_strided_slice %3 {offsets = [0, 16], sizes = [8, 8], strides = [1, 1]} : vector<8x32xf32> to vector<8x8xf32>
    %52 = arith.truncf %51 : vector<8x8xf32> to vector<8x8xbf16>
    %53 = vector.extract_strided_slice %4 {offsets = [0, 16], sizes = [8, 8], strides = [1, 1]} : vector<8x32xf32> to vector<8x8xf32>
    %54 = arith.truncf %53 : vector<8x8xf32> to vector<8x8xbf16>
    %cst_12 = arith.constant dense<0.000000e+00> : vector<8x8xf32>
    %55 = tpu.matmul %50, %52, %cst_12 {dimension_numbers = #tpu.dot_dimension_numbers<[1], [1], [0], [0], [0, 0, 1, 0], [], []>} : vector<8x8xbf16>, vector<8x8xbf16>, vector<8x8xf32> -> vector<8x8xf32>
    %cst_13 = arith.constant dense<0xFF800000> : vector<8xf32>
    %56 = vector.multi_reduction <maximumf>, %55, %cst_13 [1] : vector<8x8xf32> to vector<8xf32>
    %57 = vector.shape_cast %56 : vector<8xf32> to vector<8x1xf32>
    %58 = vector.broadcast %57 : vector<8x1xf32> to vector<8x8xf32>
    %59 = arith.subf %55, %58 : vector<8x8xf32>
    %60 = math.exp %59 : vector<8x8xf32>
    %cst_14 = arith.constant dense<0.000000e+00> : vector<8xf32>
    %61 = vector.multi_reduction <add>, %60, %cst_14 [1] : vector<8x8xf32> to vector<8xf32>
    %62 = vector.shape_cast %61 : vector<8xf32> to vector<8x1xf32>
    %63 = tpu.reciprocal %62 {approx = true} : vector<8x1xf32> -> vector<8x1xf32>
    %64 = arith.truncf %60 : vector<8x8xf32> to vector<8x8xbf16>
    %cst_15 = arith.constant dense<0.000000e+00> : vector<8x8xf32>
    %65 = tpu.matmul %64, %54, %cst_15 {dimension_numbers = #tpu.dot_dimension_numbers<[1], [0], [0], [1], [0, 0, 1, 1], [], []>} : vector<8x8xbf16>, vector<8x8xbf16>, vector<8x8xf32> -> vector<8x8xf32>
    %66 = vector.broadcast %63 : vector<8x1xf32> to vector<8x8xf32>
    %67 = arith.mulf %65, %66 : vector<8x8xf32>
    %68 = vector.extract_strided_slice %2 {offsets = [0, 24], sizes = [8, 8], strides = [1, 1]} : vector<8x32xf32> to vector<8x8xf32>
    %cst_16 = arith.constant 0.353553385 : f32
    %69 = vector.broadcast %cst_16 : f32 to vector<8x8xf32>
    %70 = arith.mulf %68, %69 : vector<8x8xf32>
    %71 = arith.truncf %70 : vector<8x8xf32> to vector<8x8xbf16>
    %72 = vector.extract_strided_slice %3 {offsets = [0, 24], sizes = [8, 8], strides = [1, 1]} : vector<8x32xf32> to vector<8x8xf32>
    %73 = arith.truncf %72 : vector<8x8xf32> to vector<8x8xbf16>
    %74 = vector.extract_strided_slice %4 {offsets = [0, 24], sizes = [8, 8], strides = [1, 1]} : vector<8x32xf32> to vector<8x8xf32>
    %75 = arith.truncf %74 : vector<8x8xf32> to vector<8x8xbf16>
    %cst_17 = arith.constant dense<0.000000e+00> : vector<8x8xf32>
    %76 = tpu.matmul %71, %73, %cst_17 {dimension_numbers = #tpu.dot_dimension_numbers<[1], [1], [0], [0], [0, 0, 1, 0], [], []>} : vector<8x8xbf16>, vector<8x8xbf16>, vector<8x8xf32> -> vector<8x8xf32>
    %cst_18 = arith.constant dense<0xFF800000> : vector<8xf32>
    %77 = vector.multi_reduction <maximumf>, %76, %cst_18 [1] : vector<8x8xf32> to vector<8xf32>
    %78 = vector.shape_cast %77 : vector<8xf32> to vector<8x1xf32>
    %79 = vector.broadcast %78 : vector<8x1xf32> to vector<8x8xf32>
    %80 = arith.subf %76, %79 : vector<8x8xf32>
    %81 = math.exp %80 : vector<8x8xf32>
    %cst_19 = arith.constant dense<0.000000e+00> : vector<8xf32>
    %82 = vector.multi_reduction <add>, %81, %cst_19 [1] : vector<8x8xf32> to vector<8xf32>
    %83 = vector.shape_cast %82 : vector<8xf32> to vector<8x1xf32>
    %84 = tpu.reciprocal %83 {approx = true} : vector<8x1xf32> -> vector<8x1xf32>
    %85 = arith.truncf %81 : vector<8x8xf32> to vector<8x8xbf16>
    %cst_20 = arith.constant dense<0.000000e+00> : vector<8x8xf32>
    %86 = tpu.matmul %85, %75, %cst_20 {dimension_numbers = #tpu.dot_dimension_numbers<[1], [0], [0], [1], [0, 0, 1, 1], [], []>} : vector<8x8xbf16>, vector<8x8xbf16>, vector<8x8xf32> -> vector<8x8xf32>
    %87 = vector.broadcast %84 : vector<8x1xf32> to vector<8x8xf32>
    %88 = arith.mulf %86, %87 : vector<8x8xf32>
    %89 = tpu.concatenate %25, %46, %67, %88 in 1 : vector<8x8xf32>, vector<8x8xf32>, vector<8x8xf32>, vector<8x8xf32> -> vector<8x32xf32>
    %c0_21 = arith.constant 0 : index
    %c0_22 = arith.constant 0 : index
    %c0_23 = arith.constant 0 : index
    %90 = vector.load %arg2[%c0_21, %c0_22, %c0_23] : memref<1x8x32xf32, #tpu.memory_space<vmem>>, vector<1x8x32xf32>
    %91 = vector.shape_cast %90 : vector<1x8x32xf32> to vector<8x32xf32>
    %92 = vector.shape_cast %89 : vector<8x32xf32> to vector<1x8x32xf32>
    tpu.vector_store %arg2[%c0_21, %c0_22, %c0_23], %92 {strides = array<i32>} : memref<1x8x32xf32, #tpu.memory_space<vmem>>, vector<1x8x32xf32>,
    return
  }
  func.func @transform_0(%arg0: i32) -> (i32, i32, i32) {
    %c0_i32 = arith.constant 0 : i32
    %c0_i32_0 = arith.constant 0 : i32
    %c0_i32_1 = arith.constant 0 : i32
    return %arg0, %c0_i32, %c0_i32_0 : i32, i32, i32
  }
  func.func @transform_1(%arg0: i32) -> (i32, i32, i32) {
    %c0_i32 = arith.constant 0 : i32
    %c0_i32_0 = arith.constant 0 : i32
    %c0_i32_1 = arith.constant 0 : i32
    return %arg0, %c0_i32, %c0_i32_0 : i32, i32, i32
  }
}

module attributes {stable_mosaic.version = 11 : i64} {
  func.func @kernel(%arg0: i32, %arg1: i32, %arg2: memref<16x32xf32, #tpu.memory_space<vmem>>, %arg3: memref<32x128xf32, #tpu.memory_space<vmem>>, %arg4: memref<1x128xf32, #tpu.memory_space<vmem>>, %arg5: memref<16x128xf32, #tpu.memory_space<vmem>>, %arg6: memref<16x128xf32, #tpu.memory_space<vmem>>) attributes {dimension_semantics = [#tpu.dimension_semantics<parallel>, #tpu.dimension_semantics<parallel>], iteration_bounds = array<i64: 1, 1>, scalar_prefetch = 0 : i64, scratch_operands = 0 : i64, tpu.core_type = #tpu.core_type<tc>, window_params = [{transform_indices = @transform_0, window_bounds = array<i64: 16, 32>}, {transform_indices = @transform_1, window_bounds = array<i64: 32, 128>}, {transform_indices = @transform_2, window_bounds = array<i64: 1, 128>}, {transform_indices = @transform_3, window_bounds = array<i64: 16, 128>}, {transform_indices = @transform_4, window_bounds = array<i64: 16, 128>}]} {
    %c0 = arith.constant 0 : index
    %c0_0 = arith.constant 0 : index
    %0 = vector.load %arg2[%c0, %c0_0] : memref<16x32xf32, #tpu.memory_space<vmem>>, vector<16x32xf32>
    %1 = arith.truncf %0 : vector<16x32xf32> to vector<16x32xbf16>
    %c0_1 = arith.constant 0 : index
    %c0_2 = arith.constant 0 : index
    %2 = vector.load %arg3[%c0_1, %c0_2] : memref<32x128xf32, #tpu.memory_space<vmem>>, vector<32x128xf32>
    %3 = arith.truncf %2 : vector<32x128xf32> to vector<32x128xbf16>
    %cst = arith.constant dense<0.000000e+00> : vector<16x128xf32>
    %4 = tpu.matmul %1, %3, %cst {dimension_numbers = #tpu.dot_dimension_numbers<[1], [0], [0], [1], [0, 0, 1, 1], [], []>} : vector<16x32xbf16>, vector<32x128xbf16>, vector<16x128xf32> -> vector<16x128xf32>
    %c0_3 = arith.constant 0 : index
    %c0_4 = arith.constant 0 : index
    %5 = vector.load %arg4[%c0_3, %c0_4] : memref<1x128xf32, #tpu.memory_space<vmem>>, vector<1x128xf32>
    %6 = vector.broadcast %5 : vector<1x128xf32> to vector<16x128xf32>
    %7 = arith.addf %4, %6 : vector<16x128xf32>
    %c0_5 = arith.constant 0 : index
    %c0_6 = arith.constant 0 : index
    %8 = vector.load %arg5[%c0_5, %c0_6] : memref<16x128xf32, #tpu.memory_space<vmem>>, vector<16x128xf32>
    %9 = arith.addf %7, %8 : vector<16x128xf32>
    %c0_7 = arith.constant 0 : index
    %c0_8 = arith.constant 0 : index
    %10 = vector.load %arg6[%c0_7, %c0_8] : memref<16x128xf32, #tpu.memory_space<vmem>>, vector<16x128xf32>
    tpu.vector_store %arg6[%c0_7, %c0_8], %9 {strides = array<i32>} : memref<16x128xf32, #tpu.memory_space<vmem>>, vector<16x128xf32>,
    return
  }
  func.func @transform_0(%arg0: i32, %arg1: i32) -> (i32, i32) {
    %c0_i32 = arith.constant 0 : i32
    %c0_i32_0 = arith.constant 0 : i32
    return %arg0, %c0_i32 : i32, i32
  }
  func.func @transform_1(%arg0: i32, %arg1: i32) -> (i32, i32) {
    %c0_i32 = arith.constant 0 : i32
    %c0_i32_0 = arith.constant 0 : i32
    return %c0_i32, %arg1 : i32, i32
  }
  func.func @transform_2(%arg0: i32, %arg1: i32) -> (i32, i32) {
    %c0_i32 = arith.constant 0 : i32
    %c0_i32_0 = arith.constant 0 : i32
    return %c0_i32, %arg1 : i32, i32
  }
  func.func @transform_3(%arg0: i32, %arg1: i32) -> (i32, i32) {
    %c0_i32 = arith.constant 0 : i32
    return %arg0, %arg1 : i32, i32
  }
  func.func @transform_4(%arg0: i32, %arg1: i32) -> (i32, i32) {
    %c0_i32 = arith.constant 0 : i32
    return %arg0, %arg1 : i32, i32
  }
}

module attributes {stable_mosaic.version = 11 : i64} {
  func.func @kernel(%arg0: i32, %arg1: i32, %arg2: memref<16x32xf32, #tpu.memory_space<vmem>>, %arg3: memref<1x32xf32, #tpu.memory_space<vmem>>, %arg4: memref<1x32xf32, #tpu.memory_space<vmem>>, %arg5: memref<32x128xf32, #tpu.memory_space<vmem>>, %arg6: memref<1x128xf32, #tpu.memory_space<vmem>>, %arg7: memref<16x128xf32, #tpu.memory_space<vmem>>) attributes {dimension_semantics = [#tpu.dimension_semantics<parallel>, #tpu.dimension_semantics<parallel>], iteration_bounds = array<i64: 1, 1>, scalar_prefetch = 0 : i64, scratch_operands = 0 : i64, tpu.core_type = #tpu.core_type<tc>, window_params = [{transform_indices = @transform_0, window_bounds = array<i64: 16, 32>}, {pipeline_mode = #tpu.pipeline_mode<synchronous>, transform_indices = @transform_1, window_bounds = array<i64: 1, 32>}, {pipeline_mode = #tpu.pipeline_mode<synchronous>, transform_indices = @transform_2, window_bounds = array<i64: 1, 32>}, {transform_indices = @transform_3, window_bounds = array<i64: 32, 128>}, {transform_indices = @transform_4, window_bounds = array<i64: 1, 128>}, {transform_indices = @transform_5, window_bounds = array<i64: 16, 128>}]} {
    %c0 = arith.constant 0 : index
    %c0_0 = arith.constant 0 : index
    %0 = vector.load %arg2[%c0, %c0_0] : memref<16x32xf32, #tpu.memory_space<vmem>>, vector<16x32xf32>
    %cst = arith.constant dense<0.000000e+00> : vector<16xf32>
    %1 = vector.multi_reduction <add>, %0, %cst [1] : vector<16x32xf32> to vector<16xf32>
    %2 = vector.shape_cast %1 : vector<16xf32> to vector<16x1xf32>
    %cst_1 = arith.constant 3.200000e+01 : f32
    %3 = vector.broadcast %cst_1 : f32 to vector<16x1xf32>
    %4 = arith.divf %2, %3 : vector<16x1xf32>
    %5 = vector.broadcast %4 : vector<16x1xf32> to vector<16x32xf32>
    %6 = arith.subf %0, %5 : vector<16x32xf32>
    %7 = arith.mulf %6, %6 : vector<16x32xf32>
    %cst_2 = arith.constant dense<0.000000e+00> : vector<16xf32>
    %8 = vector.multi_reduction <add>, %7, %cst_2 [1] : vector<16x32xf32> to vector<16xf32>
    %9 = vector.shape_cast %8 : vector<16xf32> to vector<16x1xf32>
    %cst_3 = arith.constant 3.200000e+01 : f32
    %10 = vector.broadcast %cst_3 : f32 to vector<16x1xf32>
    %11 = arith.divf %9, %10 : vector<16x1xf32>
    %12 = vector.broadcast %4 : vector<16x1xf32> to vector<16x32xf32>
    %13 = arith.subf %0, %12 : vector<16x32xf32>
    %cst_4 = arith.constant 9.99999974E-6 : f32
    %14 = vector.broadcast %cst_4 : f32 to vector<16x1xf32>
    %15 = arith.addf %11, %14 : vector<16x1xf32>
    %16 = math.rsqrt %15 : vector<16x1xf32>
    %17 = vector.broadcast %16 : vector<16x1xf32> to vector<16x32xf32>
    %18 = arith.mulf %13, %17 : vector<16x32xf32>
    %c0_5 = arith.constant 0 : index
    %c0_6 = arith.constant 0 : index
    %19 = vector.load %arg3[%c0_5, %c0_6] : memref<1x32xf32, #tpu.memory_space<vmem>>, vector<1x32xf32>
    %20 = vector.broadcast %19 : vector<1x32xf32> to vector<16x32xf32>
    %21 = arith.mulf %18, %20 : vector<16x32xf32>
    %c0_7 = arith.constant 0 : index
    %c0_8 = arith.constant 0 : index
    %22 = vector.load %arg4[%c0_7, %c0_8] : memref<1x32xf32, #tpu.memory_space<vmem>>, vector<1x32xf32>
    %23 = vector.broadcast %22 : vector<1x32xf32> to vector<16x32xf32>
    %24 = arith.addf %21, %23 : vector<16x32xf32>
    %25 = arith.truncf %24 : vector<16x32xf32> to vector<16x32xbf16>
    %c0_9 = arith.constant 0 : index
    %c0_10 = arith.constant 0 : index
    %26 = vector.load %arg5[%c0_9, %c0_10] : memref<32x128xf32, #tpu.memory_space<vmem>>, vector<32x128xf32>
    %27 = arith.truncf %26 : vector<32x128xf32> to vector<32x128xbf16>
    %cst_11 = arith.constant dense<0.000000e+00> : vector<16x128xf32>
    %28 = tpu.matmul %25, %27, %cst_11 {dimension_numbers = #tpu.dot_dimension_numbers<[1], [0], [0], [1], [0, 0, 1, 1], [], []>} : vector<16x32xbf16>, vector<32x128xbf16>, vector<16x128xf32> -> vector<16x128xf32>
    %c0_12 = arith.constant 0 : index
    %c0_13 = arith.constant 0 : index
    %29 = vector.load %arg6[%c0_12, %c0_13] : memref<1x128xf32, #tpu.memory_space<vmem>>, vector<1x128xf32>
    %30 = vector.broadcast %29 : vector<1x128xf32> to vector<16x128xf32>
    %31 = arith.addf %28, %30 : vector<16x128xf32>
    %cst_14 = arith.constant 5.000000e-01 : f32
    %32 = vector.broadcast %cst_14 : f32 to vector<16x128xf32>
    %33 = arith.mulf %32, %31 : vector<16x128xf32>
    %cst_15 = arith.constant 0.707106769 : f32
    %34 = vector.broadcast %cst_15 : f32 to vector<16x128xf32>
    %35 = arith.mulf %31, %34 : vector<16x128xf32>
    %36 = math.absf %35 : vector<16x128xf32>
    %cst_16 = arith.constant 0.327591091 : f32
    %37 = vector.broadcast %cst_16 : f32 to vector<16x128xf32>
    %38 = arith.mulf %37, %36 : vector<16x128xf32>
    %cst_17 = arith.constant 1.000000e+00 : f32
    %39 = vector.broadcast %cst_17 : f32 to vector<16x128xf32>
    %40 = arith.addf %39, %38 : vector<16x128xf32>
    %cst_18 = arith.constant 1.000000e+00 : f32
    %41 = vector.broadcast %cst_18 : f32 to vector<16x128xf32>
    %42 = arith.divf %41, %40 : vector<16x128xf32>
    %cst_19 = arith.constant 1.06140542 : f32
    %43 = vector.broadcast %cst_19 : f32 to vector<16x128xf32>
    %44 = arith.mulf %43, %42 : vector<16x128xf32>
    %cst_20 = arith.constant 1.45315206 : f32
    %45 = vector.broadcast %cst_20 : f32 to vector<16x128xf32>
    %46 = arith.subf %44, %45 : vector<16x128xf32>
    %47 = arith.mulf %46, %42 : vector<16x128xf32>
    %cst_21 = arith.constant 1.42141378 : f32
    %48 = vector.broadcast %cst_21 : f32 to vector<16x128xf32>
    %49 = arith.addf %47, %48 : vector<16x128xf32>
    %50 = arith.mulf %49, %42 : vector<16x128xf32>
    %cst_22 = arith.constant 0.284496725 : f32
    %51 = vector.broadcast %cst_22 : f32 to vector<16x128xf32>
    %52 = arith.subf %50, %51 : vector<16x128xf32>
    %53 = arith.mulf %52, %42 : vector<16x128xf32>
    %cst_23 = arith.constant 0.254829586 : f32
    %54 = vector.broadcast %cst_23 : f32 to vector<16x128xf32>
    %55 = arith.addf %53, %54 : vector<16x128xf32>
    %56 = arith.mulf %55, %42 : vector<16x128xf32>
    %57 = arith.mulf %36, %36 : vector<16x128xf32>
    %cst_24 = arith.constant 0.000000e+00 : f32
    %58 = vector.broadcast %cst_24 : f32 to vector<16x128xf32>
    %59 = arith.subf %58, %57 : vector<16x128xf32>
    %60 = math.exp %59 : vector<16x128xf32>
    %61 = arith.mulf %56, %60 : vector<16x128xf32>
    %cst_25 = arith.constant 1.000000e+00 : f32
    %62 = vector.broadcast %cst_25 : f32 to vector<16x128xf32>
    %63 = arith.subf %62, %61 : vector<16x128xf32>
    %cst_26 = arith.constant 0.000000e+00 : f32
    %64 = vector.broadcast %cst_26 : f32 to vector<16x128xf32>
    %65 = arith.cmpf olt, %35, %64 : vector<16x128xf32>
    %cst_27 = arith.constant 0.000000e+00 : f32
    %66 = vector.broadcast %cst_27 : f32 to vector<16x128xf32>
    %67 = arith.subf %66, %63 : vector<16x128xf32>
    %68 = arith.select %65, %67, %63 : vector<16x128xi1>, vector<16x128xf32>
    %cst_28 = arith.constant 1.000000e+00 : f32
    %69 = vector.broadcast %cst_28 : f32 to vector<16x128xf32>
    %70 = arith.addf %69, %68 : vector<16x128xf32>
    %71 = arith.mulf %33, %70 : vector<16x128xf32>
    %c0_29 = arith.constant 0 : index
    %c0_30 = arith.constant 0 : index
    %72 = vector.load %arg7[%c0_29, %c0_30] : memref<16x128xf32, #tpu.memory_space<vmem>>, vector<16x128xf32>
    tpu.vector_store %arg7[%c0_29, %c0_30], %71 {strides = array<i32>} : memref<16x128xf32, #tpu.memory_space<vmem>>, vector<16x128xf32>,
    return
  }
  func.func @transform_0(%arg0: i32, %arg1: i32) -> (i32, i32) {
    %c0_i32 = arith.constant 0 : i32
    %c0_i32_0 = arith.constant 0 : i32
    return %arg0, %c0_i32 : i32, i32
  }
  func.func @transform_1(%arg0: i32, %arg1: i32) -> (i32, i32) {
    %c0_i32 = arith.constant 0 : i32
    %c0_i32_0 = arith.constant 0 : i32
    %c0_i32_1 = arith.constant 0 : i32
    return %c0_i32, %c0_i32_0 : i32, i32
  }
  func.func @transform_2(%arg0: i32, %arg1: i32) -> (i32, i32) {
    %c0_i32 = arith.constant 0 : i32
    %c0_i32_0 = arith.constant 0 : i32
    %c0_i32_1 = arith.constant 0 : i32
    return %c0_i32, %c0_i32_0 : i32, i32
  }
  func.func @transform_3(%arg0: i32, %arg1: i32) -> (i32, i32) {
    %c0_i32 = arith.constant 0 : i32
    %c0_i32_0 = arith.constant 0 : i32
    return %c0_i32, %arg1 : i32, i32
  }
  func.func @transform_4(%arg0: i32, %arg1: i32) -> (i32, i32) {
    %c0_i32 = arith.constant 0 : i32
    %c0_i32_0 = arith.constant 0 : i32
    return %c0_i32, %arg1 : i32, i32
  }
  func.func @transform_5(%arg0: i32, %arg1: i32) -> (i32, i32) {
    %c0_i32 = arith.constant 0 : i32
    return %arg0, %arg1 : i32, i32
  }
}

module attributes {stable_mosaic.version = 11 : i64} {
  func.func @kernel(%arg0: i32, %arg1: i32, %arg2: memref<16x128xf32, #tpu.memory_space<vmem>>, %arg3: memref<128x128xf32, #tpu.memory_space<vmem>>, %arg4: memref<1x128xf32, #tpu.memory_space<vmem>>, %arg5: memref<16x128xf32, #tpu.memory_space<vmem>>, %arg6: memref<16x128xf32, #tpu.memory_space<vmem>>) attributes {dimension_semantics = [#tpu.dimension_semantics<parallel>, #tpu.dimension_semantics<parallel>], iteration_bounds = array<i64: 1, 1>, scalar_prefetch = 0 : i64, scratch_operands = 0 : i64, tpu.core_type = #tpu.core_type<tc>, window_params = [{transform_indices = @transform_0, window_bounds = array<i64: 16, 128>}, {transform_indices = @transform_1, window_bounds = array<i64: 128, 128>}, {transform_indices = @transform_2, window_bounds = array<i64: 1, 128>}, {transform_indices = @transform_3, window_bounds = array<i64: 16, 128>}, {transform_indices = @transform_4, window_bounds = array<i64: 16, 128>}]} {
    %c0 = arith.constant 0 : index
    %c0_0 = arith.constant 0 : index
    %0 = vector.load %arg2[%c0, %c0_0] : memref<16x128xf32, #tpu.memory_space<vmem>>, vector<16x128xf32>
    %1 = arith.truncf %0 : vector<16x128xf32> to vector<16x128xbf16>
    %c0_1 = arith.constant 0 : index
    %c0_2 = arith.constant 0 : index
    %2 = vector.load %arg3[%c0_1, %c0_2] : memref<128x128xf32, #tpu.memory_space<vmem>>, vector<128x128xf32>
    %3 = arith.truncf %2 : vector<128x128xf32> to vector<128x128xbf16>
    %cst = arith.constant dense<0.000000e+00> : vector<16x128xf32>
    %4 = tpu.matmul %1, %3, %cst {dimension_numbers = #tpu.dot_dimension_numbers<[1], [0], [0], [1], [0, 0, 1, 1], [], []>} : vector<16x128xbf16>, vector<128x128xbf16>, vector<16x128xf32> -> vector<16x128xf32>
    %c0_3 = arith.constant 0 : index
    %c0_4 = arith.constant 0 : index
    %5 = vector.load %arg4[%c0_3, %c0_4] : memref<1x128xf32, #tpu.memory_space<vmem>>, vector<1x128xf32>
    %6 = vector.broadcast %5 : vector<1x128xf32> to vector<16x128xf32>
    %7 = arith.addf %4, %6 : vector<16x128xf32>
    %c0_5 = arith.constant 0 : index
    %c0_6 = arith.constant 0 : index
    %8 = vector.load %arg5[%c0_5, %c0_6] : memref<16x128xf32, #tpu.memory_space<vmem>>, vector<16x128xf32>
    %9 = arith.addf %7, %8 : vector<16x128xf32>
    %c0_7 = arith.constant 0 : index
    %c0_8 = arith.constant 0 : index
    %10 = vector.load %arg6[%c0_7, %c0_8] : memref<16x128xf32, #tpu.memory_space<vmem>>, vector<16x128xf32>
    tpu.vector_store %arg6[%c0_7, %c0_8], %9 {strides = array<i32>} : memref<16x128xf32, #tpu.memory_space<vmem>>, vector<16x128xf32>,
    return
  }
  func.func @transform_0(%arg0: i32, %arg1: i32) -> (i32, i32) {
    %c0_i32 = arith.constant 0 : i32
    %c0_i32_0 = arith.constant 0 : i32
    return %arg0, %c0_i32 : i32, i32
  }
  func.func @transform_1(%arg0: i32, %arg1: i32) -> (i32, i32) {
    %c0_i32 = arith.constant 0 : i32
    %c0_i32_0 = arith.constant 0 : i32
    return %c0_i32, %arg1 : i32, i32
  }
  func.func @transform_2(%arg0: i32, %arg1: i32) -> (i32, i32) {
    %c0_i32 = arith.constant 0 : i32
    %c0_i32_0 = arith.constant 0 : i32
    return %c0_i32, %arg1 : i32, i32
  }
  func.func @transform_3(%arg0: i32, %arg1: i32) -> (i32, i32) {
    %c0_i32 = arith.constant 0 : i32
    return %arg0, %arg1 : i32, i32
  }
  func.func @transform_4(%arg0: i32, %arg1: i32) -> (i32, i32) {
    %c0_i32 = arith.constant 0 : i32
    return %arg0, %arg1 : i32, i32
  }
}

module attributes {stable_mosaic.version = 11 : i64} {
  func.func @_cross_attn_kernel(%arg0: i32, %arg1: memref<1x8x32xf32, #tpu.memory_space<vmem>>, %arg2: memref<1x8x64xf32, #tpu.memory_space<vmem>>, %arg3: memref<1x8x32xf32, #tpu.memory_space<vmem>>) attributes {dimension_semantics = [#tpu.dimension_semantics<parallel>], iteration_bounds = array<i64: 2>, scalar_prefetch = 0 : i64, scratch_operands = 0 : i64, tpu.core_type = #tpu.core_type<tc>, window_params = [{transform_indices = @transform_0, window_bounds = array<i64: 1, 8, 32>}, {transform_indices = @transform_1, window_bounds = array<i64: 1, 8, 64>}, {transform_indices = @transform_2, window_bounds = array<i64: 1, 8, 32>}]} {
    %c0 = arith.constant 0 : index
    %c0_0 = arith.constant 0 : index
    %c0_1 = arith.constant 0 : index
    %0 = vector.load %arg1[%c0, %c0_0, %c0_1] : memref<1x8x32xf32, #tpu.memory_space<vmem>>, vector<1x8x32xf32>
    %1 = vector.shape_cast %0 : vector<1x8x32xf32> to vector<8x32xf32>
    %c0_2 = arith.constant 0 : index
    %c0_3 = arith.constant 0 : index
    %c0_4 = arith.constant 0 : index
    %2 = vector.load %arg2[%c0_2, %c0_3, %c0_4] : memref<1x8x64xf32, #tpu.memory_space<vmem>>, vector<1x8x64xf32>
    %3 = vector.shape_cast %2 : vector<1x8x64xf32> to vector<8x64xf32>
    %4 = vector.extract_strided_slice %3 {offsets = [0, 0], sizes = [8, 32], strides = [1, 1]} : vector<8x64xf32> to vector<8x32xf32>
    %5 = vector.extract_strided_slice %3 {offsets = [0, 32], sizes = [8, 32], strides = [1, 1]} : vector<8x64xf32> to vector<8x32xf32>
    %6 = vector.extract_strided_slice %1 {offsets = [0, 0], sizes = [8, 8], strides = [1, 1]} : vector<8x32xf32> to vector<8x8xf32>
    %cst = arith.constant 0.353553385 : f32
    %7 = vector.broadcast %cst : f32 to vector<8x8xf32>
    %8 = arith.mulf %6, %7 : vector<8x8xf32>
    %9 = arith.truncf %8 : vector<8x8xf32> to vector<8x8xbf16>
    %10 = vector.extract_strided_slice %4 {offsets = [0, 0], sizes = [8, 8], strides = [1, 1]} : vector<8x32xf32> to vector<8x8xf32>
    %11 = arith.truncf %10 : vector<8x8xf32> to vector<8x8xbf16>
    %12 = vector.extract_strided_slice %5 {offsets = [0, 0], sizes = [8, 8], strides = [1, 1]} : vector<8x32xf32> to vector<8x8xf32>
    %13 = arith.truncf %12 : vector<8x8xf32> to vector<8x8xbf16>
    %cst_5 = arith.constant dense<0.000000e+00> : vector<8x8xf32>
    %14 = tpu.matmul %9, %11, %cst_5 {dimension_numbers = #tpu.dot_dimension_numbers<[1], [1], [0], [0], [0, 0, 1, 0], [], []>} : vector<8x8xbf16>, vector<8x8xbf16>, vector<8x8xf32> -> vector<8x8xf32>
    %cst_6 = arith.constant dense<0xFF800000> : vector<8xf32>
    %15 = vector.multi_reduction <maximumf>, %14, %cst_6 [1] : vector<8x8xf32> to vector<8xf32>
    %16 = vector.shape_cast %15 : vector<8xf32> to vector<8x1xf32>
    %17 = vector.broadcast %16 : vector<8x1xf32> to vector<8x8xf32>
    %18 = arith.subf %14, %17 : vector<8x8xf32>
    %19 = math.exp %18 : vector<8x8xf32>
    %cst_7 = arith.constant dense<0.000000e+00> : vector<8xf32>
    %20 = vector.multi_reduction <add>, %19, %cst_7 [1] : vector<8x8xf32> to vector<8xf32>
    %21 = vector.shape_cast %20 : vector<8xf32> to vector<8x1xf32>
    %22 = tpu.reciprocal %21 {approx = true} : vector<8x1xf32> -> vector<8x1xf32>
    %23 = arith.truncf %19 : vector<8x8xf32> to vector<8x8xbf16>
    %cst_8 = arith.constant dense<0.000000e+00> : vector<8x8xf32>
    %24 = tpu.matmul %23, %13, %cst_8 {dimension_numbers = #tpu.dot_dimension_numbers<[1], [0], [0], [1], [0, 0, 1, 1], [], []>} : vector<8x8xbf16>, vector<8x8xbf16>, vector<8x8xf32> -> vector<8x8xf32>
    %25 = vector.broadcast %22 : vector<8x1xf32> to vector<8x8xf32>
    %26 = arith.mulf %24, %25 : vector<8x8xf32>
    %27 = vector.extract_strided_slice %1 {offsets = [0, 8], sizes = [8, 8], strides = [1, 1]} : vector<8x32xf32> to vector<8x8xf32>
    %cst_9 = arith.constant 0.353553385 : f32
    %28 = vector.broadcast %cst_9 : f32 to vector<8x8xf32>
    %29 = arith.mulf %27, %28 : vector<8x8xf32>
    %30 = arith.truncf %29 : vector<8x8xf32> to vector<8x8xbf16>
    %31 = vector.extract_strided_slice %4 {offsets = [0, 8], sizes = [8, 8], strides = [1, 1]} : vector<8x32xf32> to vector<8x8xf32>
    %32 = arith.truncf %31 : vector<8x8xf32> to vector<8x8xbf16>
    %33 = vector.extract_strided_slice %5 {offsets = [0, 8], sizes = [8, 8], strides = [1, 1]} : vector<8x32xf32> to vector<8x8xf32>
    %34 = arith.truncf %33 : vector<8x8xf32> to vector<8x8xbf16>
    %cst_10 = arith.constant dense<0.000000e+00> : vector<8x8xf32>
    %35 = tpu.matmul %30, %32, %cst_10 {dimension_numbers = #tpu.dot_dimension_numbers<[1], [1], [0], [0], [0, 0, 1, 0], [], []>} : vector<8x8xbf16>, vector<8x8xbf16>, vector<8x8xf32> -> vector<8x8xf32>
    %cst_11 = arith.constant dense<0xFF800000> : vector<8xf32>
    %36 = vector.multi_reduction <maximumf>, %35, %cst_11 [1] : vector<8x8xf32> to vector<8xf32>
    %37 = vector.shape_cast %36 : vector<8xf32> to vector<8x1xf32>
    %38 = vector.broadcast %37 : vector<8x1xf32> to vector<8x8xf32>
    %39 = arith.subf %35, %38 : vector<8x8xf32>
    %40 = math.exp %39 : vector<8x8xf32>
    %cst_12 = arith.constant dense<0.000000e+00> : vector<8xf32>
    %41 = vector.multi_reduction <add>, %40, %cst_12 [1] : vector<8x8xf32> to vector<8xf32>
    %42 = vector.shape_cast %41 : vector<8xf32> to vector<8x1xf32>
    %43 = tpu.reciprocal %42 {approx = true} : vector<8x1xf32> -> vector<8x1xf32>
    %44 = arith.truncf %40 : vector<8x8xf32> to vector<8x8xbf16>
    %cst_13 = arith.constant dense<0.000000e+00> : vector<8x8xf32>
    %45 = tpu.matmul %44, %34, %cst_13 {dimension_numbers = #tpu.dot_dimension_numbers<[1], [0], [0], [1], [0, 0, 1, 1], [], []>} : vector<8x8xbf16>, vector<8x8xbf16>, vector<8x8xf32> -> vector<8x8xf32>
    %46 = vector.broadcast %43 : vector<8x1xf32> to vector<8x8xf32>
    %47 = arith.mulf %45, %46 : vector<8x8xf32>
    %48 = vector.extract_strided_slice %1 {offsets = [0, 16], sizes = [8, 8], strides = [1, 1]} : vector<8x32xf32> to vector<8x8xf32>
    %cst_14 = arith.constant 0.353553385 : f32
    %49 = vector.broadcast %cst_14 : f32 to vector<8x8xf32>
    %50 = arith.mulf %48, %49 : vector<8x8xf32>
    %51 = arith.truncf %50 : vector<8x8xf32> to vector<8x8xbf16>
    %52 = vector.extract_strided_slice %4 {offsets = [0, 16], sizes = [8, 8], strides = [1, 1]} : vector<8x32xf32> to vector<8x8xf32>
    %53 = arith.truncf %52 : vector<8x8xf32> to vector<8x8xbf16>
    %54 = vector.extract_strided_slice %5 {offsets = [0, 16], sizes = [8, 8], strides = [1, 1]} : vector<8x32xf32> to vector<8x8xf32>
    %55 = arith.truncf %54 : vector<8x8xf32> to vector<8x8xbf16>
    %cst_15 = arith.constant dense<0.000000e+00> : vector<8x8xf32>
    %56 = tpu.matmul %51, %53, %cst_15 {dimension_numbers = #tpu.dot_dimension_numbers<[1], [1], [0], [0], [0, 0, 1, 0], [], []>} : vector<8x8xbf16>, vector<8x8xbf16>, vector<8x8xf32> -> vector<8x8xf32>
    %cst_16 = arith.constant dense<0xFF800000> : vector<8xf32>
    %57 = vector.multi_reduction <maximumf>, %56, %cst_16 [1] : vector<8x8xf32> to vector<8xf32>
    %58 = vector.shape_cast %57 : vector<8xf32> to vector<8x1xf32>
    %59 = vector.broadcast %58 : vector<8x1xf32> to vector<8x8xf32>
    %60 = arith.subf %56, %59 : vector<8x8xf32>
    %61 = math.exp %60 : vector<8x8xf32>
    %cst_17 = arith.constant dense<0.000000e+00> : vector<8xf32>
    %62 = vector.multi_reduction <add>, %61, %cst_17 [1] : vector<8x8xf32> to vector<8xf32>
    %63 = vector.shape_cast %62 : vector<8xf32> to vector<8x1xf32>
    %64 = tpu.reciprocal %63 {approx = true} : vector<8x1xf32> -> vector<8x1xf32>
    %65 = arith.truncf %61 : vector<8x8xf32> to vector<8x8xbf16>
    %cst_18 = arith.constant dense<0.000000e+00> : vector<8x8xf32>
    %66 = tpu.matmul %65, %55, %cst_18 {dimension_numbers = #tpu.dot_dimension_numbers<[1], [0], [0], [1], [0, 0, 1, 1], [], []>} : vector<8x8xbf16>, vector<8x8xbf16>, vector<8x8xf32> -> vector<8x8xf32>
    %67 = vector.broadcast %64 : vector<8x1xf32> to vector<8x8xf32>
    %68 = arith.mulf %66, %67 : vector<8x8xf32>
    %69 = vector.extract_strided_slice %1 {offsets = [0, 24], sizes = [8, 8], strides = [1, 1]} : vector<8x32xf32> to vector<8x8xf32>
    %cst_19 = arith.constant 0.353553385 : f32
    %70 = vector.broadcast %cst_19 : f32 to vector<8x8xf32>
    %71 = arith.mulf %69, %70 : vector<8x8xf32>
    %72 = arith.truncf %71 : vector<8x8xf32> to vector<8x8xbf16>
    %73 = vector.extract_strided_slice %4 {offsets = [0, 24], sizes = [8, 8], strides = [1, 1]} : vector<8x32xf32> to vector<8x8xf32>
    %74 = arith.truncf %73 : vector<8x8xf32> to vector<8x8xbf16>
    %75 = vector.extract_strided_slice %5 {offsets = [0, 24], sizes = [8, 8], strides = [1, 1]} : vector<8x32xf32> to vector<8x8xf32>
    %76 = arith.truncf %75 : vector<8x8xf32> to vector<8x8xbf16>
    %cst_20 = arith.constant dense<0.000000e+00> : vector<8x8xf32>
    %77 = tpu.matmul %72, %74, %cst_20 {dimension_numbers = #tpu.dot_dimension_numbers<[1], [1], [0], [0], [0, 0, 1, 0], [], []>} : vector<8x8xbf16>, vector<8x8xbf16>, vector<8x8xf32> -> vector<8x8xf32>
    %cst_21 = arith.constant dense<0xFF800000> : vector<8xf32>
    %78 = vector.multi_reduction <maximumf>, %77, %cst_21 [1] : vector<8x8xf32> to vector<8xf32>
    %79 = vector.shape_cast %78 : vector<8xf32> to vector<8x1xf32>
    %80 = vector.broadcast %79 : vector<8x1xf32> to vector<8x8xf32>
    %81 = arith.subf %77, %80 : vector<8x8xf32>
    %82 = math.exp %81 : vector<8x8xf32>
    %cst_22 = arith.constant dense<0.000000e+00> : vector<8xf32>
    %83 = vector.multi_reduction <add>, %82, %cst_22 [1] : vector<8x8xf32> to vector<8xf32>
    %84 = vector.shape_cast %83 : vector<8xf32> to vector<8x1xf32>
    %85 = tpu.reciprocal %84 {approx = true} : vector<8x1xf32> -> vector<8x1xf32>
    %86 = arith.truncf %82 : vector<8x8xf32> to vector<8x8xbf16>
    %cst_23 = arith.constant dense<0.000000e+00> : vector<8x8xf32>
    %87 = tpu.matmul %86, %76, %cst_23 {dimension_numbers = #tpu.dot_dimension_numbers<[1], [0], [0], [1], [0, 0, 1, 1], [], []>} : vector<8x8xbf16>, vector<8x8xbf16>, vector<8x8xf32> -> vector<8x8xf32>
    %88 = vector.broadcast %85 : vector<8x1xf32> to vector<8x8xf32>
    %89 = arith.mulf %87, %88 : vector<8x8xf32>
    %90 = tpu.concatenate %26, %47, %68, %89 in 1 : vector<8x8xf32>, vector<8x8xf32>, vector<8x8xf32>, vector<8x8xf32> -> vector<8x32xf32>
    %c0_24 = arith.constant 0 : index
    %c0_25 = arith.constant 0 : index
    %c0_26 = arith.constant 0 : index
    %91 = vector.load %arg3[%c0_24, %c0_25, %c0_26] : memref<1x8x32xf32, #tpu.memory_space<vmem>>, vector<1x8x32xf32>
    %92 = vector.shape_cast %91 : vector<1x8x32xf32> to vector<8x32xf32>
    %93 = vector.shape_cast %90 : vector<8x32xf32> to vector<1x8x32xf32>
    tpu.vector_store %arg3[%c0_24, %c0_25, %c0_26], %93 {strides = array<i32>} : memref<1x8x32xf32, #tpu.memory_space<vmem>>, vector<1x8x32xf32>,
    return
  }
  func.func @transform_0(%arg0: i32) -> (i32, i32, i32) {
    %c0_i32 = arith.constant 0 : i32
    %c0_i32_0 = arith.constant 0 : i32
    %c0_i32_1 = arith.constant 0 : i32
    return %arg0, %c0_i32, %c0_i32_0 : i32, i32, i32
  }
  func.func @transform_1(%arg0: i32) -> (i32, i32, i32) {
    %c0_i32 = arith.constant 0 : i32
    %c0_i32_0 = arith.constant 0 : i32
    %c0_i32_1 = arith.constant 0 : i32
    return %arg0, %c0_i32, %c0_i32_0 : i32, i32, i32
  }
  func.func @transform_2(%arg0: i32) -> (i32, i32, i32) {
    %c0_i32 = arith.constant 0 : i32
    %c0_i32_0 = arith.constant 0 : i32
    %c0_i32_1 = arith.constant 0 : i32
    return %arg0, %c0_i32, %c0_i32_0 : i32, i32, i32
  }
}

module attributes {stable_mosaic.version = 11 : i64} {
  func.func @kernel(%arg0: i32, %arg1: i32, %arg2: memref<8x32xf32, #tpu.memory_space<vmem>>, %arg3: memref<1x32xf32, #tpu.memory_space<vmem>>, %arg4: memref<1x32xf32, #tpu.memory_space<vmem>>, %arg5: memref<32x128xf32, #tpu.memory_space<vmem>>, %arg6: memref<1x128xf32, #tpu.memory_space<vmem>>, %arg7: memref<8x128xf32, #tpu.memory_space<vmem>>) attributes {dimension_semantics = [#tpu.dimension_semantics<parallel>, #tpu.dimension_semantics<parallel>], iteration_bounds = array<i64: 1, 1>, scalar_prefetch = 0 : i64, scratch_operands = 0 : i64, tpu.core_type = #tpu.core_type<tc>, window_params = [{transform_indices = @transform_0, window_bounds = array<i64: 8, 32>}, {pipeline_mode = #tpu.pipeline_mode<synchronous>, transform_indices = @transform_1, window_bounds = array<i64: 1, 32>}, {pipeline_mode = #tpu.pipeline_mode<synchronous>, transform_indices = @transform_2, window_bounds = array<i64: 1, 32>}, {transform_indices = @transform_3, window_bounds = array<i64: 32, 128>}, {transform_indices = @transform_4, window_bounds = array<i64: 1, 128>}, {transform_indices = @transform_5, window_bounds = array<i64: 8, 128>}]} {
    %c0 = arith.constant 0 : index
    %c0_0 = arith.constant 0 : index
    %0 = vector.load %arg2[%c0, %c0_0] : memref<8x32xf32, #tpu.memory_space<vmem>>, vector<8x32xf32>
    %cst = arith.constant dense<0.000000e+00> : vector<8xf32>
    %1 = vector.multi_reduction <add>, %0, %cst [1] : vector<8x32xf32> to vector<8xf32>
    %2 = vector.shape_cast %1 : vector<8xf32> to vector<8x1xf32>
    %cst_1 = arith.constant 3.200000e+01 : f32
    %3 = vector.broadcast %cst_1 : f32 to vector<8x1xf32>
    %4 = arith.divf %2, %3 : vector<8x1xf32>
    %5 = vector.broadcast %4 : vector<8x1xf32> to vector<8x32xf32>
    %6 = arith.subf %0, %5 : vector<8x32xf32>
    %7 = arith.mulf %6, %6 : vector<8x32xf32>
    %cst_2 = arith.constant dense<0.000000e+00> : vector<8xf32>
    %8 = vector.multi_reduction <add>, %7, %cst_2 [1] : vector<8x32xf32> to vector<8xf32>
    %9 = vector.shape_cast %8 : vector<8xf32> to vector<8x1xf32>
    %cst_3 = arith.constant 3.200000e+01 : f32
    %10 = vector.broadcast %cst_3 : f32 to vector<8x1xf32>
    %11 = arith.divf %9, %10 : vector<8x1xf32>
    %12 = vector.broadcast %4 : vector<8x1xf32> to vector<8x32xf32>
    %13 = arith.subf %0, %12 : vector<8x32xf32>
    %cst_4 = arith.constant 9.99999974E-6 : f32
    %14 = vector.broadcast %cst_4 : f32 to vector<8x1xf32>
    %15 = arith.addf %11, %14 : vector<8x1xf32>
    %16 = math.rsqrt %15 : vector<8x1xf32>
    %17 = vector.broadcast %16 : vector<8x1xf32> to vector<8x32xf32>
    %18 = arith.mulf %13, %17 : vector<8x32xf32>
    %c0_5 = arith.constant 0 : index
    %c0_6 = arith.constant 0 : index
    %19 = vector.load %arg3[%c0_5, %c0_6] : memref<1x32xf32, #tpu.memory_space<vmem>>, vector<1x32xf32>
    %20 = vector.broadcast %19 : vector<1x32xf32> to vector<8x32xf32>
    %21 = arith.mulf %18, %20 : vector<8x32xf32>
    %c0_7 = arith.constant 0 : index
    %c0_8 = arith.constant 0 : index
    %22 = vector.load %arg4[%c0_7, %c0_8] : memref<1x32xf32, #tpu.memory_space<vmem>>, vector<1x32xf32>
    %23 = vector.broadcast %22 : vector<1x32xf32> to vector<8x32xf32>
    %24 = arith.addf %21, %23 : vector<8x32xf32>
    %25 = arith.truncf %24 : vector<8x32xf32> to vector<8x32xbf16>
    %c0_9 = arith.constant 0 : index
    %c0_10 = arith.constant 0 : index
    %26 = vector.load %arg5[%c0_9, %c0_10] : memref<32x128xf32, #tpu.memory_space<vmem>>, vector<32x128xf32>
    %27 = arith.truncf %26 : vector<32x128xf32> to vector<32x128xbf16>
    %cst_11 = arith.constant dense<0.000000e+00> : vector<8x128xf32>
    %28 = tpu.matmul %25, %27, %cst_11 {dimension_numbers = #tpu.dot_dimension_numbers<[1], [0], [0], [1], [0, 0, 1, 1], [], []>} : vector<8x32xbf16>, vector<32x128xbf16>, vector<8x128xf32> -> vector<8x128xf32>
    %c0_12 = arith.constant 0 : index
    %c0_13 = arith.constant 0 : index
    %29 = vector.load %arg6[%c0_12, %c0_13] : memref<1x128xf32, #tpu.memory_space<vmem>>, vector<1x128xf32>
    %30 = vector.broadcast %29 : vector<1x128xf32> to vector<8x128xf32>
    %31 = arith.addf %28, %30 : vector<8x128xf32>
    %c0_14 = arith.constant 0 : index
    %c0_15 = arith.constant 0 : index
    %32 = vector.load %arg7[%c0_14, %c0_15] : memref<8x128xf32, #tpu.memory_space<vmem>>, vector<8x128xf32>
    tpu.vector_store %arg7[%c0_14, %c0_15], %31 {strides = array<i32>} : memref<8x128xf32, #tpu.memory_space<vmem>>, vector<8x128xf32>,
    return
  }
  func.func @transform_0(%arg0: i32, %arg1: i32) -> (i32, i32) {
    %c0_i32 = arith.constant 0 : i32
    %c0_i32_0 = arith.constant 0 : i32
    return %arg0, %c0_i32 : i32, i32
  }
  func.func @transform_1(%arg0: i32, %arg1: i32) -> (i32, i32) {
    %c0_i32 = arith.constant 0 : i32
    %c0_i32_0 = arith.constant 0 : i32
    %c0_i32_1 = arith.constant 0 : i32
    return %c0_i32, %c0_i32_0 : i32, i32
  }
  func.func @transform_2(%arg0: i32, %arg1: i32) -> (i32, i32) {
    %c0_i32 = arith.constant 0 : i32
    %c0_i32_0 = arith.constant 0 : i32
    %c0_i32_1 = arith.constant 0 : i32
    return %c0_i32, %c0_i32_0 : i32, i32
  }
  func.func @transform_3(%arg0: i32, %arg1: i32) -> (i32, i32) {
    %c0_i32 = arith.constant 0 : i32
    %c0_i32_0 = arith.constant 0 : i32
    return %c0_i32, %arg1 : i32, i32
  }
  func.func @transform_4(%arg0: i32, %arg1: i32) -> (i32, i32) {
    %c0_i32 = arith.constant 0 : i32
    %c0_i32_0 = arith.constant 0 : i32
    return %c0_i32, %arg1 : i32, i32
  }
  func.func @transform_5(%arg0: i32, %arg1: i32) -> (i32, i32) {
    %c0_i32 = arith.constant 0 : i32
    return %arg0, %arg1 : i32, i32
  }
}

</mosaic_0001>

<bundles_post_ra>
// kernel: decoder_forward.24
= control target key start
LH: loop header
LB: loop body
LE: loop exit
PB: predicated region body
PF: predicated region fallthrough
CT: control target
= control target key end

     0   :  { %vm20_vm0 = vcmask 261120   ;;  %v124_v4 = vmov 32.0   ;;  %s185_s0 = inlined_call_operand.vmem [shape: f32[16,32], index: 0, kind: input, shape index: {}]   ;;  %s186_s1 = inlined_call_operand.vmem [shape: f32[1,32], index: 1, kind: input, shape index: {}]   ;;  %s187_s2 = inlined_call_operand.vmem [shape: f32[1,32], index: 2, kind: input, shape index: {}]   ;;  %s188_s3 = inlined_call_operand.vmem [shape: f32[32,128], index: 3, kind: input, shape index: {}]   ;;  %s189_s4 = inlined_call_operand.vmem [shape: f32[16,128], index: 4, kind: output, shape index: {}]  }
   0x1   :  { %v18_v0 = vld [vmem:[%s185_s0] sm:$0xff]  ;;  %v19_v2 = vld [vmem:[%s185_s0 + $0x8] sm:$0xff]  ;;  %118 = vrcp.f32 %v124_v4  ;;  %v87_v21 = vld [vmem:[%s188_s3 + $0x10] sm:$0xff] }
   0x2   :  { %v21_v1 = vsel %vm20_vm0, %v18_v0, 0.0  ;;  %v24_v3 = vsel %vm20_vm0, %v19_v2, 0.0  ;;  %v88_v22 = vld [vmem:[%s188_s3 + $0x18] sm:$0xff]  ;;  %v85_v24 = vld [vmem:[%s188_s3] sm:$0xff]  ;;  %v86_v25 = vld [vmem:[%s188_s3 + $0x8] sm:$0xff] }
   0x3   :  { %22 = vadd.xlane.f32.xlu0 %v21_v1  ;;  %v90_v23 = vpack.c.bf16 %v88_v22, %v87_v21  ;;  %v89_v27 = vpack.c.bf16 %v86_v25, %v85_v24  ;;  %v116_v46 = vld [vmem:[%s186_s1] ss:$0 sm:$0xff] }
   0x4   :  { %v117_v51 = vld [vmem:[%s187_s2] ss:$0 sm:$0xff] }
   0x5   :  { %100 = vmatpush.bf16.msra.mxu0 %v90_v23 }
   0x7   :  { %v119_v5 = vpop.eup %118 }
   0x8   :  { %v28_v6 = vmul.f32 32.0, %v119_v5  ;;  %vm32_vm1 = vweird.f32 %v119_v5 }
   0x9   :  { %101 = vmatpush.bf16.msra.mxu0 %v89_v27 }
   0xa   :  { %v29_v7 = vsub.f32 1.0, %v28_v6 }
   0xb   :  { %25 = vadd.xlane.f32.xlu0 %v24_v3 }
   0xc   :  { %v30_v8 = vmul.f32 %v119_v5, %v29_v7 }
   0xe   :  { %v31_v9 = vadd.f32 %v119_v5, %v30_v8 }
  0x10   :  { %v33_v10 = vsel %vm32_vm1, %v119_v5, %v31_v9 }
  0x76   :  { %v23_v11 = vpop.xlane.xlu0 %22 }
  0x77   :  { %v34_v12 = vmul.f32 %v33_v10, %v23_v11 }
  0x79   :  { %v36_v13 = vsub.f32 %v18_v0, %v34_v12 }
  0x7b   :  { %v38_v14 = vmul.f32 %v36_v13, %v36_v13 }
  0x7d   :  { %v40_v15 = vsel %vm20_vm0, %v38_v14, 0.0 }
  0x7e   :  { %41 = vadd.xlane.f32.xlu1 %v40_v15  ;;  %v26_v16 = vpop.xlane.xlu0 %25 }
  0x7f   :  { %v35_v17 = vmul.f32 %v33_v10, %v26_v16 }
  0x81   :  { %v37_v18 = vsub.f32 %v19_v2, %v35_v17 }
  0x83   :  { %v39_v19 = vmul.f32 %v37_v18, %v37_v18 }
  0x85   :  { %v43_v20 = vsel %vm20_vm0, %v39_v19, 0.0 }
  0x86   :  { %44 = vadd.xlane.f32.xlu1 %v43_v20 }
  0xf1   :  { %v42_v26 = vpop.xlane.xlu1 %41 }
  0xf2   :  { %v46_v28 = vmul.f32 %v42_v26, %v33_v10 }
  0xf4   :  { %v48_v29 = vadd.f32 1e-05, %v46_v28 }
  0xf6   :  { %120 = vrsqrt.f32 %v48_v29  ;;  %vm56_vm3 = vweird.f32 %v48_v29 }
  0xf9   :  { %v45_v30 = vpop.xlane.xlu1 %44 }
  0xfa   :  { %v47_v31 = vmul.f32 %v45_v30, %v33_v10 }
  0xfc   :  { %v121_v32 = vpop.eup %120  ;;  %v49_v33 = vadd.f32 1e-05, %v47_v31 }
  0xfd   :  { %v51_v34 = vmul.f32 %v121_v32, %v48_v29  ;;  %vm57_vm2 = vweird.f32 %v121_v32 }
  0xfe   :  { %122 = vrsqrt.f32 %v49_v33  ;;  %vm58_vm4 = vmor %vm56_vm3, %vm57_vm2  ;;  %vm66_vm6 = vweird.f32 %v49_v33 }
  0xff   :  { %v52_v35 = vmul.f32 %v121_v32, %v51_v34 }
 0x101   :  { %v53_v36 = vmul.f32 0.5, %v52_v35 }
 0x103   :  { %v54_v37 = vsub.f32 1.5, %v53_v36 }
 0x104   :  { %v123_v38 = vpop.eup %122 }
 0x105   :  { %v55_v39 = vmul.f32 %v121_v32, %v54_v37  ;;  %v61_v40 = vmul.f32 %v123_v38, %v49_v33  ;;  %vm67_vm5 = vweird.f32 %v123_v38 }
 0x106   :  { %vm68_vm7 = vmor %vm66_vm6, %vm67_vm5 }
 0x107   :  { %v62_v41 = vmul.f32 %v123_v38, %v61_v40  ;;  %v59_v42 = vsel %vm58_vm4, %v121_v32, %v55_v39 }
 0x108   :  { %v70_v45 = vmul.f32 %v59_v42, %v36_v13 }
 0x109   :  { %v63_v43 = vmul.f32 0.5, %v62_v41 }
 0x10a   :  { %v76_v50 = vmul.f32 %v116_v46, %v70_v45 }
 0x10b   :  { %v64_v44 = vsub.f32 1.5, %v63_v43 }
 0x10c   :  { %v82_v53 = vadd.f32 %v117_v51, %v76_v50 }
 0x10d   :  { %v65_v47 = vmul.f32 %v123_v38, %v64_v44 }
 0x10f   :  { %v69_v48 = vsel %vm68_vm7, %v123_v38, %v65_v47 }
 0x110   :  { %v71_v49 = vmul.f32 %v69_v48, %v37_v18 }
 0x112   :  { %v77_v52 = vmul.f32 %v116_v46, %v71_v49 }
 0x114   :  { %v83_v54 = vadd.f32 %v117_v51, %v77_v52 }
 0x116   :  { %v84_v55 = vpack.c.bf16 %v83_v54, %v82_v53 }
 0x118   :  { %114 = vmatmul.msk.bf16.vlgmr.msra.gmra.mxu0 %vm20_vm0, %v84_v55 }
 0x195   :  { %v103_v56 = vpop.f32.mrf.mxu0 }
 0x196   :  { %108 = vst [vmem:[%s189_s4] sm:$0xff] %v103_v56 }
 0x19d   :  { %v105_v57 = vpop.f32.mrf.mxu0 }
 0x19e   :  { %109 = vst [vmem:[%s189_s4 + $0x8] sm:$0xff] %v105_v57 }

// kernel: decoder_forward.25
= control target key start
LH: loop header
LB: loop body
LE: loop exit
PB: predicated region body
PF: predicated region fallthrough
CT: control target
= control target key end

     0   :  { %s502_s6 = smov 0   ;;  %s551_s0 = inlined_call_operand.vmem [shape: f32[2,8,96], index: 0, kind: input, shape index: {}]   ;;  %s552_s1 = inlined_call_operand.vmem [shape: f32[2,8,32], index: 1, kind: output, shape index: {}]  }
   0x1 LB: > { %s415_s7 = sadd.s32 4294967295, %s476_s6   ;;  %p419_p0 = scmp.ge.s32.totalorder %s476_s6, 1  ;;  %s476_s6 = sphi %s502_s6, %s11_s6  }
   0x2   : > { %p86_p1 = scmp.lt.s32.totalorder %s476_s6, 3 }
   0x4   : > { %p87_p2 = pnand %p419_p0, %p86_p1 }
   0x5   : > { %p104_p3 = scmp.lt.s32.totalorder (!%p87_p2), %s415_s7, 1  ;;  %s478_s12 = smov (!%p87_p2), 96  }
   0x6   : > { %90 = sbr.rel (%p87_p2) target bundleno = 920 (0x398), region = 24  ;;  %s479_s13 = smov (!%p87_p2), 88  }
   0x7   : > { %s480_s14 = smov (!%p87_p2), 120   ;;  %s481_s15 = smov (!%p87_p2), 72  }
   0x8   : > { %s482_s16 = smov (!%p87_p2), 104   ;;  %s483_s17 = smov (!%p87_p2), 64  }
   0x9   : > { %s484_s18 = smov (!%p87_p2), 80   ;;  %s485_s19 = smov (!%p87_p2), 112  }
   0xa   : > { %s486_s20 = smov (!%p87_p2), 56   ;;  %s487_s21 = smov (!%p87_p2), 40  }
   0xb   : > { %s554_s7 = smov (!%p104_p3, %s415_s7), 1  ;;  %vm120_vm0 = vcmask 64512   ;;  %vm156_vm1 = vcmask 1043456   ;;  %s488_s22 = smov 48   ;;  %vm356_vm2 = vcmask 130048   ;;  %vm358_vm3 = vcmask 195584  }
   0xc   : > { %s420_s8 = sshll.u32 %s554_s7, 3  ;;  %s489_s23 = smov 8   ;;  %vm360_vm4 = vcmask 261120  }
   0xd   : > { %s107_s11 = scalar_lea.vmem %s551_s0, %s420_s8  ;;  %s490_s24 = smov 24  }
   0xe   : > { %v113_v0 = vld [vmem:[%s107_s11] sm:$0xff]  ;;  %s491_s25 = smov 16   ;;  %s111_s28 = scalar_lea.vmem %s552_s1, %s420_s8 }
   0xf   : > { %v116_v1 = vpack.c.bf16 %v113_v0, %v113_v0  ;;  %v114_v2 = vmul.f32 0.35355338, %v113_v0 }
  0x11   : > { %118 = vrot.lane.b32.xlu0 %v116_v1, %s478_s12  ;;  %177 = vrot.lane.b32.xlu1 %v116_v1, %s479_s13  ;;  %v115_v3 = vpack.c.bf16 %v114_v2, %v114_v2 }
  0x12   : > { %151 = vrot.lane.b32.xlu2 %v116_v1, %s483_s17 }
  0x19   : > { %175 = vrot.lane.b32.xlu1 %v115_v3, %s480_s14 }
  0x1a   : > { %233 = vrot.lane.b32.xlu2 %v116_v1, %s484_s18 }
  0x21   : > { %289 = vrot.lane.b32.xlu1 %v116_v1, %s481_s15 }
  0x22   : > { %231 = vrot.lane.b32.xlu2 %v115_v3, %s485_s19 }
  0x29   : > { %287 = vrot.lane.b32.xlu1 %v115_v3, %s482_s16 }
  0x31   : > { %209 = vrot.lane.b32.xlu1 %v116_v1, %s486_s20 }
  0x6c   : > { %v152_v17 = vpop.permute.xlu2 %151 }
  0x6d   : > { %v158_v18 = vsel %vm156_vm1, %v152_v17, 0 }
  0x6e   : > { %167 = vmatpush.bf16.msra.mxu1 %v158_v18 }
  0x74   : > { %v234_v22 = vpop.permute.xlu2 %233 }
  0x75   : > { %v239_v23 = vsel %vm120_vm0, %v234_v22, 0 }
  0x76   : > { %248 = vmatpush.bf16.xpose.msrb.mxu1 %v239_v23 }
  0x7c   : > { %v232_v30 = vpop.permute.xlu2 %231 }
  0x83   : > { %v119_v4 = vpop.permute.xlu0 %118  ;;  %v178_v5 = vpop.permute.xlu1 %177 }
  0x84   : > { %v125_v6 = vsel %vm120_vm0, %v119_v4, 0  ;;  %v183_v7 = vsel %vm120_vm0, %v178_v5, 0 }
  0x85   : > { %134 = vmatpush.bf16.xpose.msra.mxu0 %v125_v6  ;;  %192 = vmatpush.bf16.xpose.msra.mxu2 %v183_v7 }
  0x8b   : > { %v176_v8 = vpop.permute.xlu1 %175 }
  0x8c   : > { %422 = vmatmul.msk.bf16.vlgmr.msra.gmra.mxu0 %vm120_vm0, %v115_v3  ;;  %424 = vmatmul.msk.bf16.vlgmr.msra.gmra.mxu2 %vm120_vm0, %v176_v8 }
  0x93   : > { %v290_v9 = vpop.permute.xlu1 %289 }
  0x94   : > { %v295_v10 = vsel %vm120_vm0, %v290_v9, 0 }
  0x95   : > { %304 = vmatpush.bf16.xpose.msrb.mxu0 %v295_v10 }
  0x9b   : > { %v288_v11 = vpop.permute.xlu1 %287 }
  0x9c   : > { %428 = vmatmul.msk.bf16.vlgmr.msrb.gmra.mxu0 %vm120_vm0, %v288_v11 }
  0xa3   : > { %v210_v31 = vpop.permute.xlu1 %209 }
  0xa4   : > { %v215_v32 = vsel %vm156_vm1, %v210_v31, 0 }
  0xa5   : > { %224 = vmatpush.bf16.msra.mxu3 %v215_v32 }
 0x109   : > { %v136_v12 = vpop.f32.mrf.mxu0 }
 0x10a   : > { %v140_v13 = vsel %vm120_vm0, %v136_v12, -inf }
 0x10b   : > { %141 = vmax.xlane.f32.xlu0 %v140_v13 }
 0x10f   : > { %v194_v15 = vpop.f32.mrf.mxu2 }
 0x110   : > { %v198_v16 = vsel %vm120_vm0, %v194_v15, -inf }
 0x111   : > { %v138_v14 = vpop.f32.mrf.mxu0  ;;  %199 = vmax.xlane.f32.xlu2 %v198_v16 }
 0x117   : > { %v196_v19 = vpop.f32.mrf.mxu2 }
 0x119   : > { %v306_v20 = vpop.f32.mrf.mxu0 }
 0x11a   : > { %v310_v21 = vsel %vm120_vm0, %v306_v20, -inf }
 0x11b   : > { %311 = vmax.xlane.f32.xlu0 %v310_v21 }
 0x121   : > { %v308_v24 = vpop.f32.mrf.mxu0 }
 0x129   : > { %321 = vrot.lane.b32.xlu2 %v116_v1, %s487_s21 }
 0x12f   : > { %265 = vrot.lane.b32.xlu0 %v116_v1, %s488_s22 }
 0x17e   : > { %v142_v25 = vpop.xlane.xlu0 %141 }
 0x17f   : > { %v143_v26 = vsub.f32 %v136_v12, %v142_v25 }
 0x181   : > { %v144_v27 = vmul.f32 1.442695, %v143_v26 }
 0x183   : > { %454 = vpow2.f32 %v144_v27 }
 0x184   : > { %v200_v33 = vpop.xlane.xlu2 %199 }
 0x185   : > { %v201_v34 = vsub.f32 %v194_v15, %v200_v33 }
 0x187   : > { %v202_v35 = vmul.f32 1.442695, %v201_v34 }
 0x189   : > { %v455_v28 = vpop.eup %454  ;;  %456 = vpow2.f32 %v202_v35 }
 0x18a   : > { %v150_v29 = vpack.c.bf16 %v455_v28, %v455_v28  ;;  %v146_v52 = vsel %vm120_vm0, %v455_v28, 0.0 }
 0x18c   : > { %423 = vmatmul.msk.bf16.vlgmr.msra.gmra.mxu1 %vm120_vm0, %v150_v29  ;;  %v322_v36 = vpop.permute.xlu2 %321 }
 0x18d   : > { %v327_v37 = vsel %vm156_vm1, %v322_v36, 0 }
 0x18e   : > { %v312_v38 = vpop.xlane.xlu0 %311  ;;  %336 = vmatpush.bf16.msrb.mxu2 %v327_v37 }
 0x18f   : > { %v457_v39 = vpop.eup %456  ;;  %v313_v40 = vsub.f32 %v306_v20, %v312_v38 }
 0x190   : > { %v208_v41 = vpack.c.bf16 %v457_v39, %v457_v39  ;;  %v204_v42 = vsel %vm120_vm0, %v457_v39, 0.0 }
 0x191   : > { %v314_v43 = vmul.f32 1.442695, %v313_v40  ;;  %205 = vadd.xlane.f32.xlu0 %v204_v42 }
 0x192   : > { %425 = vmatmul.msk.bf16.vlgmr.msra.gmra.mxu3 %vm120_vm0, %v208_v41 }
 0x193   : > { %458 = vpow2.f32 %v314_v43 }
 0x199   : > { %v459_v44 = vpop.eup %458 }
 0x19a   : > { %v320_v45 = vpack.c.bf16 %v459_v44, %v459_v44  ;;  %v316_v46 = vsel %vm120_vm0, %v459_v44, 0.0 }
 0x19b   : > { %317 = vadd.xlane.f32.xlu2 %v316_v46 }
 0x19c   : > { %426 = vmatmul.msk.bf16.vlgmr.msrb.gmra.mxu1 %vm120_vm0, %v232_v30  ;;  %429 = vmatmul.msk.bf16.vlgmr.msrb.gmra.mxu2 %vm120_vm0, %v320_v45 }
 0x1a1   : > { %v266_v53 = vpop.permute.xlu0 %265 }
 0x1a2   : > { %v271_v54 = vsel %vm156_vm1, %v266_v53, 0 }
 0x1a3   : > { %280 = vmatpush.bf16.msrb.mxu3 %v271_v54 }
 0x204   : > { %v206_v1 = vpop.xlane.xlu0 %205 }
 0x209   : > { %v169_v47 = vpop.f32.mrf.mxu1 }
 0x20e   : > { %v318_v2 = vpop.xlane.xlu2 %317 }
 0x211   : > { %v171_v48 = vpop.f32.mrf.mxu1 }
 0x215   : > { %v226_v55 = vpop.f32.mrf.mxu3 }
 0x219   : > { %v250_v49 = vpop.f32.mrf.mxu1 }
 0x21a   : > { %v254_v50 = vsel %vm120_vm0, %v250_v49, -inf }
 0x21b   : > { %255 = vmax.xlane.f32.xlu1 %v254_v50 }
 0x21d   : > { %v228_v56 = vpop.f32.mrf.mxu3 }
 0x21f   : > { %v338_v57 = vpop.f32.mrf.mxu2 }
 0x221   : > { %v252_v51 = vpop.f32.mrf.mxu1 }
 0x223   : > { %147 = vadd.xlane.f32.xlu1 %v146_v52 }
 0x227   : > { %v340_v58 = vpop.f32.mrf.mxu2 }
 0x28e   : > { %v256_v59 = vpop.xlane.xlu1 %255 }
 0x28f   : > { %v257_v60 = vsub.f32 %v250_v49, %v256_v59 }
 0x291   : > { %v258_v61 = vmul.f32 1.442695, %v257_v60 }
 0x293   : > { %460 = vpow2.f32 %v258_v61 }
 0x294   : > { %462 = vrcp.f32 %v206_v1 }
 0x295   : > { %464 = vrcp.f32 %v318_v2 }
 0x296   : > { %v148_v7 = vpop.xlane.xlu1 %147 }
 0x299   : > { %v461_v62 = vpop.eup %460 }
 0x29a   : > { %v260_v63 = vsel %vm120_vm0, %v461_v62, 0.0  ;;  %v264_v0 = vpack.c.bf16 %v461_v62, %v461_v62  ;;  %v463_v3 = vpop.eup %462 }
 0x29b   : > { %261 = vadd.xlane.f32.xlu1 %v260_v63  ;;  %v230_v4 = vmul.f32 %v463_v3, %v226_v55  ;;  %v465_v5 = vpop.eup %464 }
 0x29c   : > { %427 = vmatmul.msk.bf16.vlgmr.msrb.gmra.mxu3 %vm120_vm0, %v264_v0  ;;  %v342_v6 = vmul.f32 %v465_v5, %v338_v57 }
 0x2b4   : > { %344 = vrot.lane.b32.xlu1 %v230_v4, %s489_s23 }
 0x2bc   : > { %352 = vrot.lane.b32.xlu1 %v342_v6, %s490_s24 }
 0x30e   : > { %v262_v8 = vpop.xlane.xlu1 %261 }
 0x30f   : > { %466 = vrcp.f32 %v262_v8 }
 0x310   : > { %468 = vrcp.f32 %v148_v7 }
 0x315   : > { %v467_v9 = vpop.eup %466 }
 0x316   : > { %v469_v14 = vpop.eup %468 }
 0x317   : > { %v173_v15 = vmul.f32 %v469_v14, %v169_v47 }
 0x31f   : > { %v282_v10 = vpop.f32.mrf.mxu3 }
 0x320   : > { %v286_v11 = vmul.f32 %v467_v9, %v282_v10 }
 0x322   : > { %348 = vrot.lane.b32.xlu0 %v286_v11, %s491_s25 }
 0x326   : > { %v345_v13 = vpop.permute.xlu1 %344 }
 0x327   : > { %v284_v12 = vpop.f32.mrf.mxu3  ;;  %v355_v16 = vsel %vm120_vm0, %v173_v15, %v345_v13 }
 0x32e   : > { %v353_v18 = vpop.permute.xlu1 %352 }
 0x394   : > { %v349_v17 = vpop.permute.xlu0 %348 }
 0x395   : > { %v357_v19 = vsel %vm356_vm2, %v355_v16, %v349_v17 }
 0x396   : > { %v359_v20 = vsel %vm358_vm3, %v357_v19, %v353_v18 }
 0x397   : > { %361 = vst.msk [vmem:[%s111_s28] sm:$0xff] %vm360_vm4, %v359_v20 }
 0x398 PF: > { %s11_s6 = sadd.s32 1, %s476_s6  }
 0x399   : > { %p8_p4 = scmp.ge.s32.totalorder %s11_s6, 4  }
 0x39b   :  { %10 = sbr.rel (!%p8_p4) target bundleno = 1 (0x1), region = 54 }

// kernel: decoder_forward.26
= control target key start
LH: loop header
LB: loop body
LE: loop exit
PB: predicated region body
PF: predicated region fallthrough
CT: control target
= control target key end

     0   :  { %vm31_vm0 = vcmask 261120   ;;  %s119_s1 = inlined_call_operand.vmem [shape: f32[32,128], index: 1, kind: input, shape index: {}]   ;;  %s120_s0 = inlined_call_operand.vmem [shape: f32[16,32], index: 0, kind: input, shape index: {}]   ;;  %s121_s2 = inlined_call_operand.vmem [shape: f32[1,128], index: 2, kind: input, shape index: {}]   ;;  %s122_s3 = inlined_call_operand.vmem [shape: f32[16,128], index: 3, kind: input, shape index: {}]   ;;  %s123_s4 = inlined_call_operand.vmem [shape: f32[16,128], index: 4, kind: output, shape index: {}]  }
   0x1   :  { %v23_v0 = vld [vmem:[%s119_s1 + $0x10] sm:$0xff]  ;;  %v24_v1 = vld [vmem:[%s119_s1 + $0x18] sm:$0xff]  ;;  %v21_v2 = vld [vmem:[%s119_s1] sm:$0xff] }
   0x2   :  { %v26_v3 = vpack.c.bf16 %v24_v1, %v23_v0  ;;  %v22_v4 = vld [vmem:[%s119_s1 + $0x8] sm:$0xff]  ;;  %v18_v6 = vld [vmem:[%s120_s0] sm:$0xff] }
   0x3   :  { %v25_v5 = vpack.c.bf16 %v22_v4, %v21_v2  ;;  %v19_v7 = vld [vmem:[%s120_s0 + $0x8] sm:$0xff]  ;;  %v60_v9 = vld [vmem:[%s121_s2] ss:$0 sm:$0xff] }
   0x4   :  { %41 = vmatpush.bf16.msra.mxu0 %v26_v3  ;;  %v20_v8 = vpack.c.bf16 %v19_v7, %v18_v6  ;;  %v49_v11 = vld [vmem:[%s122_s3] sm:$0xff]  ;;  %v50_v15 = vld [vmem:[%s122_s3 + $0x8] sm:$0xff] }
   0x8   :  { %42 = vmatpush.bf16.msra.mxu0 %v25_v5 }
   0xb   :  { %59 = vmatmul.msk.bf16.vlgmr.msra.gmra.mxu0 %vm31_vm0, %v20_v8 }
  0x88   :  { %v44_v10 = vpop.f32.mrf.mxu0 }
  0x89   :  { %v45_v12 = vadd.f32 %v60_v9, %v44_v10 }
  0x8b   :  { %v51_v13 = vadd.f32 %v49_v11, %v45_v12 }
  0x8d   :  { %53 = vst [vmem:[%s123_s4] sm:$0xff] %v51_v13 }
  0x90   :  { %v46_v14 = vpop.f32.mrf.mxu0 }
  0x91   :  { %v47_v16 = vadd.f32 %v60_v9, %v46_v14 }
  0x93   :  { %v52_v17 = vadd.f32 %v50_v15, %v47_v16 }
  0x95   :  { %54 = vst [vmem:[%s123_s4 + $0x8] sm:$0xff] %v52_v17 }

// kernel: decoder_forward.27
= control target key start
LH: loop header
LB: loop body
LE: loop exit
PB: predicated region body
PF: predicated region fallthrough
CT: control target
= control target key end

     0   :  { %vm23_vm0 = vcmask 261120   ;;  %v224_v4 = vmov 32.0   ;;  %s309_s0 = inlined_call_operand.vmem [shape: f32[16,32], index: 0, kind: input, shape index: {}]   ;;  %s310_s1 = inlined_call_operand.vmem [shape: f32[1,32], index: 1, kind: input, shape index: {}]   ;;  %s311_s2 = inlined_call_operand.vmem [shape: f32[1,32], index: 2, kind: input, shape index: {}]   ;;  %s312_s4 = inlined_call_operand.vmem [shape: f32[1,128], index: 4, kind: input, shape index: {}]   ;;  %s313_s3 = inlined_call_operand.vmem [shape: f32[32,128], index: 3, kind: input, shape index: {}]   ;;  %s314_s5 = inlined_call_operand.vmem [shape: f32[16,128], index: 5, kind: output, shape index: {}]  }
   0x1   :  { %v21_v0 = vld [vmem:[%s309_s0] sm:$0xff]  ;;  %v22_v2 = vld [vmem:[%s309_s0 + $0x8] sm:$0xff]  ;;  %210 = vrcp.f32 %v224_v4  ;;  %v90_v21 = vld [vmem:[%s313_s3 + $0x10] sm:$0xff] }
   0x2   :  { %v24_v1 = vsel %vm23_vm0, %v21_v0, 0.0  ;;  %v27_v3 = vsel %vm23_vm0, %v22_v2, 0.0  ;;  %v91_v22 = vld [vmem:[%s313_s3 + $0x18] sm:$0xff]  ;;  %v88_v24 = vld [vmem:[%s313_s3] sm:$0xff]  ;;  %v89_v25 = vld [vmem:[%s313_s3 + $0x8] sm:$0xff] }
   0x3   :  { %25 = vadd.xlane.f32.xlu0 %v24_v1  ;;  %v93_v23 = vpack.c.bf16 %v91_v22, %v90_v21  ;;  %v92_v27 = vpack.c.bf16 %v89_v25, %v88_v24  ;;  %v207_v46 = vld [vmem:[%s310_s1] ss:$0 sm:$0xff] }
   0x4   :  { %v208_v51 = vld [vmem:[%s311_s2] ss:$0 sm:$0xff] }
   0x5   :  { %107 = vmatpush.bf16.msra.mxu0 %v93_v23  ;;  %v209_v56 = vld [vmem:[%s312_s4] ss:$0 sm:$0xff] }
   0x7   :  { %v211_v5 = vpop.eup %210 }
   0x8   :  { %v31_v6 = vmul.f32 32.0, %v211_v5  ;;  %vm35_vm1 = vweird.f32 %v211_v5 }
   0x9   :  { %108 = vmatpush.bf16.msra.mxu0 %v92_v27 }
   0xa   :  { %v32_v7 = vsub.f32 1.0, %v31_v6 }
   0xb   :  { %28 = vadd.xlane.f32.xlu0 %v27_v3 }
   0xc   :  { %v33_v8 = vmul.f32 %v211_v5, %v32_v7 }
   0xe   :  { %v34_v9 = vadd.f32 %v211_v5, %v33_v8 }
  0x10   :  { %v36_v10 = vsel %vm35_vm1, %v211_v5, %v34_v9 }
  0x76   :  { %v26_v11 = vpop.xlane.xlu0 %25 }
  0x77   :  { %v37_v12 = vmul.f32 %v36_v10, %v26_v11 }
  0x79   :  { %v39_v13 = vsub.f32 %v21_v0, %v37_v12 }
  0x7b   :  { %v41_v14 = vmul.f32 %v39_v13, %v39_v13 }
  0x7d   :  { %v43_v15 = vsel %vm23_vm0, %v41_v14, 0.0 }
  0x7e   :  { %44 = vadd.xlane.f32.xlu1 %v43_v15  ;;  %v29_v16 = vpop.xlane.xlu0 %28 }
  0x7f   :  { %v38_v17 = vmul.f32 %v36_v10, %v29_v16 }
  0x81   :  { %v40_v18 = vsub.f32 %v22_v2, %v38_v17 }
  0x83   :  { %v42_v19 = vmul.f32 %v40_v18, %v40_v18 }
  0x85   :  { %v46_v20 = vsel %vm23_vm0, %v42_v19, 0.0 }
  0x86   :  { %47 = vadd.xlane.f32.xlu1 %v46_v20 }
  0xf1   :  { %v45_v26 = vpop.xlane.xlu1 %44 }
  0xf2   :  { %v49_v28 = vmul.f32 %v45_v26, %v36_v10 }
  0xf4   :  { %v51_v29 = vadd.f32 1e-05, %v49_v28 }
  0xf6   :  { %212 = vrsqrt.f32 %v51_v29  ;;  %vm59_vm3 = vweird.f32 %v51_v29 }
  0xf9   :  { %v48_v30 = vpop.xlane.xlu1 %47 }
  0xfa   :  { %v50_v31 = vmul.f32 %v48_v30, %v36_v10 }
  0xfc   :  { %v213_v32 = vpop.eup %212  ;;  %v52_v33 = vadd.f32 1e-05, %v50_v31 }
  0xfd   :  { %v54_v34 = vmul.f32 %v213_v32, %v51_v29  ;;  %vm60_vm2 = vweird.f32 %v213_v32 }
  0xfe   :  { %214 = vrsqrt.f32 %v52_v33  ;;  %vm61_vm4 = vmor %vm59_vm3, %vm60_vm2  ;;  %vm69_vm6 = vweird.f32 %v52_v33 }
  0xff   :  { %v55_v35 = vmul.f32 %v213_v32, %v54_v34 }
 0x101   :  { %v56_v36 = vmul.f32 0.5, %v55_v35 }
 0x103   :  { %v57_v37 = vsub.f32 1.5, %v56_v36 }
 0x104   :  { %v215_v38 = vpop.eup %214 }
 0x105   :  { %v58_v39 = vmul.f32 %v213_v32, %v57_v37  ;;  %v64_v40 = vmul.f32 %v215_v38, %v52_v33  ;;  %vm70_vm5 = vweird.f32 %v215_v38 }
 0x106   :  { %vm71_vm7 = vmor %vm69_vm6, %vm70_vm5 }
 0x107   :  { %v65_v41 = vmul.f32 %v215_v38, %v64_v40  ;;  %v62_v42 = vsel %vm61_vm4, %v213_v32, %v58_v39 }
 0x108   :  { %v73_v45 = vmul.f32 %v62_v42, %v39_v13 }
 0x109   :  { %v66_v43 = vmul.f32 0.5, %v65_v41 }
 0x10a   :  { %v79_v50 = vmul.f32 %v207_v46, %v73_v45 }
 0x10b   :  { %v67_v44 = vsub.f32 1.5, %v66_v43 }
 0x10c   :  { %v85_v53 = vadd.f32 %v208_v51, %v79_v50 }
 0x10d   :  { %v68_v47 = vmul.f32 %v215_v38, %v67_v44 }
 0x10f   :  { %v72_v48 = vsel %vm71_vm7, %v215_v38, %v68_v47 }
 0x110   :  { %v74_v49 = vmul.f32 %v72_v48, %v40_v18 }
 0x112   :  { %v80_v52 = vmul.f32 %v207_v46, %v74_v49 }
 0x114   :  { %v86_v54 = vadd.f32 %v208_v51, %v80_v52 }
 0x116   :  { %v87_v55 = vpack.c.bf16 %v86_v54, %v85_v53 }
 0x118   :  { %201 = vmatmul.msk.bf16.vlgmr.msra.gmra.mxu0 %vm23_vm0, %v87_v55 }
 0x195   :  { %v110_v57 = vpop.f32.mrf.mxu0 }
 0x196   :  { %v287_v58 = vadd.f32 %v209_v56, %v110_v57 }
 0x198   :  { %v290_v59 = vmul.f32 0.70710677, %v287_v58  ;;  %v115_v53 = vmul.f32 0.5, %v287_v58 }
 0x19a   :  { %v119_v60 = vand.u32 2147483647, %v290_v59  ;;  %vm185_vm0 = vcmp.lt.f32.partialorder %v290_v59, 0.0 }
 0x19c   :  { %v121_v61 = vmul.f32 0.3275911, %v119_v60  ;;  %v173_v16 = vmul.f32 %v119_v60, %v119_v60 }
 0x19d   :  { %v112_v62 = vpop.f32.mrf.mxu0 }
 0x19e   :  { %v123_v63 = vadd.f32 1.0, %v121_v61  ;;  %v293_v0 = vadd.f32 %v209_v56, %v112_v62  ;;  %v175_v22 = vsub.f32 0.0, %v173_v16 }
 0x1a0   :  { %216 = vrcp.f32 %v123_v63  ;;  %v296_v1 = vmul.f32 0.70710677, %v293_v0  ;;  %v136_v8 = vand.u32 2147483648, %v123_v63  ;;  %v134_v10 = vand.u32 2147483647, %v123_v63 }
 0x1a1   :  { %vm130_vm9 = vweird.f32 %v123_v63  ;;  %v177_v29 = vmul.f32 1.442695, %v175_v22  ;;  %v116_v59 = vmul.f32 0.5, %v293_v0 }
 0x1a2   :  { %v120_v2 = vand.u32 2147483647, %v296_v1  ;;  %v137_v12 = vor.u32 1.1754944e-38, %v136_v8  ;;  %vm135_vm11 = vcmp.eq.f32.partialorder %v134_v10, 8.507059e+37  ;;  %vm186_vm1 = vcmp.lt.f32.partialorder %v296_v1, 0.0 }
 0x1a4   :  { %v122_v3 = vmul.f32 0.3275911, %v120_v2  ;;  %v174_v33 = vmul.f32 %v120_v2, %v120_v2 }
 0x1a6   :  { %v217_v4 = vpop.eup %216  ;;  %v124_v6 = vadd.f32 1.0, %v122_v3  ;;  %v176_v38 = vsub.f32 0.0, %v174_v33 }
 0x1a7   :  { %v126_v5 = vmul.f32 %v217_v4, %v123_v63  ;;  %vm131_vm8 = vweird.f32 %v217_v4 }
 0x1a8   :  { %218 = vrcp.f32 %v124_v6  ;;  %vm132_vm10 = vmor %vm130_vm9, %vm131_vm8  ;;  %v151_v21 = vand.u32 2147483648, %v124_v6  ;;  %v149_v24 = vand.u32 2147483647, %v124_v6  ;;  %vm145_vm13 = vweird.f32 %v124_v6 }
 0x1a9   :  { %v127_v7 = vsub.f32 1.0, %v126_v5  ;;  %220 = vpow2.f32 %v177_v29  ;;  %v179_v43 = vmul.f32 1.442695, %v176_v38 }
 0x1aa   :  { %v152_v28 = vor.u32 1.1754944e-38, %v151_v21  ;;  %vm150_vm15 = vcmp.eq.f32.partialorder %v149_v24, 8.507059e+37 }
 0x1ab   :  { %v128_v9 = vmul.f32 %v217_v4, %v127_v7  ;;  %222 = vpow2.f32 %v179_v43 }
 0x1ad   :  { %v129_v11 = vadd.f32 %v217_v4, %v128_v9 }
 0x1ae   :  { %v219_v13 = vpop.eup %218 }
 0x1af   :  { %v133_v14 = vsel %vm132_vm10, %v217_v4, %v129_v11  ;;  %v141_v17 = vmul.f32 %v219_v13, %v124_v6  ;;  %vm146_vm12 = vweird.f32 %v219_v13  ;;  %v221_v44 = vpop.eup %220 }
 0x1b0   :  { %v138_v15 = vsel %vm135_vm11, %v137_v12, %v133_v14  ;;  %vm147_vm14 = vmor %vm145_vm13, %vm146_vm12 }
 0x1b1   :  { %v155_v18 = vmul.f32 1.0614054, %v138_v15  ;;  %v142_v19 = vsub.f32 1.0, %v141_v17  ;;  %v223_v56 = vpop.eup %222 }
 0x1b3   :  { %v202_v20 = vadd.f32 -1.4531521, %v155_v18  ;;  %v143_v23 = vmul.f32 %v219_v13, %v142_v19 }
 0x1b5   :  { %v159_v25 = vmul.f32 %v202_v20, %v138_v15  ;;  %v144_v26 = vadd.f32 %v219_v13, %v143_v23 }
 0x1b7   :  { %v161_v27 = vadd.f32 1.4214138, %v159_v25  ;;  %v148_v30 = vsel %vm147_vm14, %v219_v13, %v144_v26 }
 0x1b8   :  { %v153_v32 = vsel %vm150_vm15, %v152_v28, %v148_v30 }
 0x1b9   :  { %v163_v31 = vmul.f32 %v161_v27, %v138_v15  ;;  %v156_v34 = vmul.f32 1.0614054, %v153_v32 }
 0x1bb   :  { %v204_v35 = vadd.f32 -0.28449672, %v163_v31  ;;  %v203_v36 = vadd.f32 -1.4531521, %v156_v34 }
 0x1bd   :  { %v167_v37 = vmul.f32 %v204_v35, %v138_v15  ;;  %v160_v39 = vmul.f32 %v203_v36, %v153_v32 }
 0x1bf   :  { %v169_v40 = vadd.f32 0.2548296, %v167_v37  ;;  %v162_v41 = vadd.f32 1.4214138, %v160_v39 }
 0x1c1   :  { %v171_v42 = vmul.f32 %v169_v40, %v138_v15  ;;  %v164_v45 = vmul.f32 %v162_v41, %v153_v32 }
 0x1c3   :  { %v181_v46 = vmul.f32 %v221_v44, %v171_v42  ;;  %v205_v47 = vadd.f32 -0.28449672, %v164_v45 }
 0x1c5   :  { %v183_v48 = vsub.f32 1.0, %v181_v46  ;;  %v168_v49 = vmul.f32 %v205_v47, %v153_v32 }
 0x1c7   :  { %v187_v50 = vsub.f32 0.0, %v183_v48  ;;  %v170_v51 = vadd.f32 0.2548296, %v168_v49 }
 0x1c9   :  { %v189_v52 = vsel %vm185_vm0, %v187_v50, %v183_v48  ;;  %v172_v55 = vmul.f32 %v170_v51, %v153_v32 }
 0x1ca   :  { %v191_v54 = vadd.f32 1.0, %v189_v52 }
 0x1cb   :  { %v182_v60 = vmul.f32 %v223_v56, %v172_v55 }
 0x1cc   :  { %v193_v57 = vmul.f32 %v191_v54, %v115_v53 }
 0x1cd   :  { %v184_v61 = vsub.f32 1.0, %v182_v60 }
 0x1ce   :  { %195 = vst [vmem:[%s314_s5] sm:$0xff] %v193_v57 }
 0x1cf   :  { %v188_v62 = vsub.f32 0.0, %v184_v61 }
 0x1d1   :  { %v190_v63 = vsel %vm186_vm1, %v188_v62, %v184_v61 }
 0x1d2   :  { %v192_v2 = vadd.f32 1.0, %v190_v63 }
 0x1d4   :  { %v194_v3 = vmul.f32 %v192_v2, %v116_v59 }
 0x1d6   :  { %196 = vst [vmem:[%s314_s5 + $0x8] sm:$0xff] %v194_v3 }

// kernel: decoder_forward.28
= control target key start
LH: loop header
LB: loop body
LE: loop exit
PB: predicated region body
PF: predicated region fallthrough
CT: control target
= control target key end

     0   :  { %s167_s1 = inlined_call_operand.vmem [shape: f32[128,128], index: 1, kind: input, shape index: {}]   ;;  %s168_s2 = inlined_call_operand.vmem [shape: f32[1,128], index: 2, kind: input, shape index: {}]   ;;  %s169_s0 = inlined_call_operand.vmem [shape: f32[16,128], index: 0, kind: input, shape index: {}]   ;;  %s170_s3 = inlined_call_operand.vmem [shape: f32[16,128], index: 3, kind: input, shape index: {}]   ;;  %s171_s4 = inlined_call_operand.vmem [shape: f32[16,128], index: 4, kind: output, shape index: {}]  }
   0x1   :  { %v34_v0 = vld [vmem:[%s167_s1 + $0x70] sm:$0xff]  ;;  %v35_v1 = vld [vmem:[%s167_s1 + $0x78] sm:$0xff]  ;;  %v32_v2 = vld [vmem:[%s167_s1 + $0x60] sm:$0xff] }
   0x2   :  { %v43_v3 = vpack.c.bf16 %v35_v1, %v34_v0  ;;  %v33_v4 = vld [vmem:[%s167_s1 + $0x68] sm:$0xff]  ;;  %v30_v6 = vld [vmem:[%s167_s1 + $0x50] sm:$0xff]  ;;  %v31_v7 = vld [vmem:[%s167_s1 + $0x58] sm:$0xff] }
   0x3   :  { %v42_v5 = vpack.c.bf16 %v33_v4, %v32_v2  ;;  %v41_v8 = vpack.c.bf16 %v31_v7, %v30_v6  ;;  %v28_v9 = vld [vmem:[%s167_s1 + $0x40] sm:$0xff]  ;;  %v29_v10 = vld [vmem:[%s167_s1 + $0x48] sm:$0xff]  ;;  %v26_v12 = vld [vmem:[%s167_s1 + $0x30] sm:$0xff] }
   0x4   :  { %48 = vmatpush.bf16.msra.mxu0 %v43_v3  ;;  %v40_v11 = vpack.c.bf16 %v29_v10, %v28_v9  ;;  %v27_v13 = vld [vmem:[%s167_s1 + $0x38] sm:$0xff]  ;;  %v24_v15 = vld [vmem:[%s167_s1 + $0x20] sm:$0xff]  ;;  %v25_v16 = vld [vmem:[%s167_s1 + $0x28] sm:$0xff] }
   0x5   :  { %v39_v14 = vpack.c.bf16 %v27_v13, %v26_v12  ;;  %v38_v17 = vpack.c.bf16 %v25_v16, %v24_v15  ;;  %v22_v18 = vld [vmem:[%s167_s1 + $0x10] sm:$0xff]  ;;  %v23_v19 = vld [vmem:[%s167_s1 + $0x18] sm:$0xff]  ;;  %v20_v21 = vld [vmem:[%s167_s1] sm:$0xff] }
   0x6   :  { %v37_v20 = vpack.c.bf16 %v23_v19, %v22_v18  ;;  %v21_v22 = vld [vmem:[%s167_s1 + $0x8] sm:$0xff]  ;;  %v17_v24 = vld [vmem:[%s169_s0] sm:$0xff] }
   0x7   :  { %v36_v23 = vpack.c.bf16 %v21_v22, %v20_v21  ;;  %v18_v25 = vld [vmem:[%s169_s0 + $0x8] sm:$0xff]  ;;  %v72_v27 = vld [vmem:[%s168_s2] ss:$0 sm:$0xff] }
   0x8   :  { %49 = vmatpush.bf16.msra.mxu0 %v42_v5  ;;  %v19_v26 = vpack.c.bf16 %v18_v25, %v17_v24  ;;  %v62_v29 = vld [vmem:[%s170_s3] sm:$0xff]  ;;  %v63_v33 = vld [vmem:[%s170_s3 + $0x8] sm:$0xff] }
   0xc   :  { %50 = vmatpush.bf16.msra.mxu0 %v41_v8 }
  0x10   :  { %51 = vmatpush.bf16.msra.mxu0 %v40_v11 }
  0x14   :  { %52 = vmatpush.bf16.msra.mxu0 %v39_v14 }
  0x18   :  { %53 = vmatpush.bf16.msra.mxu0 %v38_v17 }
  0x1c   :  { %54 = vmatpush.bf16.msra.mxu0 %v37_v20 }
  0x20   :  { %55 = vmatpush.bf16.msra.mxu0 %v36_v23 }
  0x23   :  { %56 = vmatmul.bf16.vlgmr.msra.gmra.mxu0 %v19_v26 }
  0xa0   :  { %v57_v28 = vpop.f32.mrf.mxu0 }
  0xa1   :  { %v58_v30 = vadd.f32 %v72_v27, %v57_v28 }
  0xa3   :  { %v64_v31 = vadd.f32 %v62_v29, %v58_v30 }
  0xa5   :  { %66 = vst [vmem:[%s171_s4] sm:$0xff] %v64_v31 }
  0xa8   :  { %v59_v32 = vpop.f32.mrf.mxu0 }
  0xa9   :  { %v60_v34 = vadd.f32 %v72_v27, %v59_v32 }
  0xab   :  { %v65_v35 = vadd.f32 %v63_v33, %v60_v34 }
  0xad   :  { %67 = vst [vmem:[%s171_s4 + $0x8] sm:$0xff] %v65_v35 }

// kernel: decoder_forward.31
= control target key start
LH: loop header
LB: loop body
LE: loop exit
PB: predicated region body
PF: predicated region fallthrough
CT: control target
= control target key end

     0   :  { %s555_s9 = smov 0   ;;  %s618_s0 = inlined_call_operand.vmem [shape: f32[2,8,32], index: 0, kind: input, shape index: {}]   ;;  %s619_s1 = inlined_call_operand.vmem [shape: f32[2,8,64], index: 1, kind: input, shape index: {}]   ;;  %s620_s2 = inlined_call_operand.vmem [shape: f32[2,8,32], index: 2, kind: output, shape index: {}]  }
   0x1 LB: > { %s470_s10 = sadd.s32 4294967295, %s528_s9   ;;  %p474_p0 = scmp.ge.s32.totalorder %s528_s9, 1  ;;  %s528_s9 = sphi %s555_s9, %s12_s9  }
   0x2   : > { %p120_p1 = scmp.lt.s32.totalorder %s528_s9, 3 }
   0x4   : > { %p121_p2 = pnand %p474_p0, %p120_p1 }
   0x5   : > { %p144_p3 = scmp.lt.s32.totalorder (!%p121_p2), %s470_s10, 1  ;;  %s530_s18 = smov (!%p121_p2), 112  }
   0x6   : > { %124 = sbr.rel (%p121_p2) target bundleno = 816 (0x330), region = 28  ;;  %s531_s19 = smov (!%p121_p2), 104  }
   0x7   : > { %s532_s20 = smov (!%p121_p2), 120   ;;  %s533_s21 = smov (!%p121_p2), 96  }
   0x8   : > { %s534_s22 = smov (!%p121_p2), 88   ;;  %s535_s23 = smov (!%p121_p2), 72  }
   0x9   : > { %s536_s24 = smov (!%p121_p2), 80   ;;  %s537_s25 = smov (!%p121_p2), 8  }
   0xa   : > { %s538_s26 = smov (!%p121_p2), 24   ;;  %s539_s27 = smov (!%p121_p2), 16  }
   0xb   : > { %s622_s10 = smov (!%p144_p3, %s470_s10), 1  ;;  %vm162_vm0 = vcmask 64512   ;;  %vm199_vm1 = vcmask 1043456   ;;  %vm399_vm2 = vcmask 130048   ;;  %vm401_vm3 = vcmask 195584  }
   0xc   : > { %s563_s11 = sshll.u32 %s622_s10, 3  ;;  %vm403_vm4 = vcmask 261120  }
   0xd   : > { %s151_s14 = scalar_lea.vmem %s619_s1, %s563_s11  ;;  %s147_s17 = scalar_lea.vmem %s618_s0, %s563_s11 }
   0xe   : > { %v158_v0 = vld [vmem:[%s151_s14] sm:$0xff]  ;;  %s155_s30 = scalar_lea.vmem %s620_s2, %s563_s11 }
   0xf   : > { %v157_v1 = vld [vmem:[%s147_s17] sm:$0xff]  ;;  %v573_v2 = vpack.c.bf16 %v158_v0, %v158_v0 }
  0x10   : > { %v159_v4 = vmul.f32 0.35355338, %v157_v1 }
  0x11   : > { %v167_v3 = vsel %vm162_vm0, %v573_v2, 0  ;;  %276 = vrot.lane.b32.xlu2 %v573_v2, %s530_s18 }
  0x12   : > { %176 = vmatpush.bf16.xpose.msra.mxu0 %v167_v3  ;;  %v160_v5 = vpack.c.bf16 %v159_v4, %v159_v4 }
  0x14   : > { %218 = vrot.lane.b32.xlu1 %v160_v5, %s532_s20 }
  0x19   : > { %478 = vmatmul.msk.bf16.vlgmr.msra.gmra.mxu0 %vm162_vm0, %v160_v5  ;;  %332 = vrot.lane.b32.xlu2 %v573_v2, %s531_s19 }
  0x1c   : > { %194 = vrot.lane.b32.xlu1 %v573_v2, %s533_s21 }
  0x21   : > { %330 = vrot.lane.b32.xlu2 %v160_v5, %s531_s19 }
  0x24   : > { %274 = vrot.lane.b32.xlu1 %v160_v5, %s530_s18 }
  0x29   : > { %252 = vrot.lane.b32.xlu2 %v573_v2, %s534_s22 }
  0x6b   : > { %v277_v6 = vpop.permute.xlu2 %276 }
  0x6c   : > { %v282_v16 = vsel %vm162_vm0, %v277_v6, 0 }
  0x73   : > { %v333_v7 = vpop.permute.xlu2 %332 }
  0x74   : > { %v338_v8 = vsel %vm162_vm0, %v333_v7, 0 }
  0x75   : > { %347 = vmatpush.bf16.xpose.msrb.mxu0 %v338_v8 }
  0x7b   : > { %v331_v11 = vpop.permute.xlu2 %330 }
  0x7c   : > { %484 = vmatmul.msk.bf16.vlgmr.msrb.gmra.mxu0 %vm162_vm0, %v331_v11 }
  0x83   : > { %v253_v36 = vpop.permute.xlu2 %252 }
  0x84   : > { %v258_v37 = vsel %vm199_vm1, %v253_v36, 0 }
  0x85   : > { %267 = vmatpush.bf16.msra.mxu3 %v258_v37 }
  0x86   : > { %v219_v13 = vpop.permute.xlu1 %218 }
  0x8e   : > { %v195_v14 = vpop.permute.xlu1 %194 }
  0x8f   : > { %v201_v15 = vsel %vm199_vm1, %v195_v14, 0 }
  0x90   : > { %210 = vmatpush.bf16.msra.mxu1 %v201_v15 }
  0x94   : > { %291 = vmatpush.bf16.xpose.msrb.mxu1 %v282_v16 }
  0x96   : > { %v178_v9 = vpop.f32.mrf.mxu0  ;;  %v275_v27 = vpop.permute.xlu1 %274 }
  0x97   : > { %v182_v10 = vsel %vm162_vm0, %v178_v9, -inf }
  0x98   : > { %183 = vmax.xlane.f32.xlu0 %v182_v10 }
  0x9e   : > { %v180_v12 = vpop.f32.mrf.mxu0 }
  0xac   : > { %220 = vrot.lane.b32.xlu0 %v573_v2, %s532_s20 }
  0xf9   : > { %v349_v22 = vpop.f32.mrf.mxu0 }
  0xfa   : > { %v353_v23 = vsel %vm162_vm0, %v349_v22, -inf }
  0xfb   : > { %354 = vmax.xlane.f32.xlu2 %v353_v23 }
 0x101   : > { %v351_v26 = vpop.f32.mrf.mxu0 }
 0x10b   : > { %v184_v17 = vpop.xlane.xlu0 %183 }
 0x10c   : > { %v185_v18 = vsub.f32 %v178_v9, %v184_v17 }
 0x10e   : > { %v186_v19 = vmul.f32 1.442695, %v185_v18 }
 0x110   : > { %506 = vpow2.f32 %v186_v19 }
 0x116   : > { %v507_v20 = vpop.eup %506 }
 0x117   : > { %v192_v21 = vpack.c.bf16 %v507_v20, %v507_v20  ;;  %v188_v38 = vsel %vm162_vm0, %v507_v20, 0.0 }
 0x119   : > { %479 = vmatmul.msk.bf16.vlgmr.msra.gmra.mxu1 %vm162_vm0, %v192_v21 }
 0x11e   : > { %v221_v24 = vpop.permute.xlu0 %220 }
 0x11f   : > { %v226_v25 = vsel %vm162_vm0, %v221_v24, 0 }
 0x120   : > { %235 = vmatpush.bf16.xpose.msra.mxu2 %v226_v25 }
 0x127   : > { %480 = vmatmul.msk.bf16.vlgmr.msra.gmra.mxu2 %vm162_vm0, %v219_v13 }
 0x129   : > { %482 = vmatmul.msk.bf16.vlgmr.msrb.gmra.mxu1 %vm162_vm0, %v275_v27 }
 0x16e   : > { %v355_v39 = vpop.xlane.xlu2 %354 }
 0x16f   : > { %v356_v42 = vsub.f32 %v349_v22, %v355_v39 }
 0x171   : > { %v357_v46 = vmul.f32 1.442695, %v356_v42 }
 0x196   : > { %v593_v28 = vpop.f32.mrf.mxu1 }
 0x19e   : > { %v214_v29 = vpop.f32.mrf.mxu1 }
 0x1a6   : > { %v293_v30 = vpop.f32.mrf.mxu1 }
 0x1a7   : > { %v297_v31 = vsel %vm162_vm0, %v293_v30, -inf }
 0x1a8   : > { %298 = vmax.xlane.f32.xlu0 %v297_v31 }
 0x1aa   : > { %v237_v32 = vpop.f32.mrf.mxu2 }
 0x1ab   : > { %v241_v33 = vsel %vm162_vm0, %v237_v32, -inf }
 0x1ac   : > { %242 = vmax.xlane.f32.xlu1 %v241_v33 }
 0x1ae   : > { %v295_v34 = vpop.f32.mrf.mxu1 }
 0x1b2   : > { %v239_v35 = vpop.f32.mrf.mxu2 }
 0x1bc   : > { %364 = vrot.lane.b32.xlu0 %v573_v2, %s535_s23 }
 0x1c5   : > { %308 = vrot.lane.b32.xlu1 %v573_v2, %s536_s24 }
 0x1e6   : > { %189 = vadd.xlane.f32.xlu0 %v188_v38 }
 0x21b   : > { %v299_v40 = vpop.xlane.xlu0 %298 }
 0x21c   : > { %v300_v44 = vsub.f32 %v293_v30, %v299_v40 }
 0x21e   : > { %v301_v47 = vmul.f32 1.442695, %v300_v44 }
 0x21f   : > { %v243_v41 = vpop.xlane.xlu1 %242 }
 0x220   : > { %v244_v43 = vsub.f32 %v237_v32, %v243_v41 }
 0x222   : > { %v245_v45 = vmul.f32 1.442695, %v244_v43 }
 0x224   : > { %508 = vpow2.f32 %v245_v45 }
 0x225   : > { %510 = vpow2.f32 %v357_v46 }
 0x226   : > { %512 = vpow2.f32 %v301_v47 }
 0x22a   : > { %v509_v48 = vpop.eup %508 }
 0x22b   : > { %v247_v49 = vsel %vm162_vm0, %v509_v48, 0.0  ;;  %v251_v50 = vpack.c.bf16 %v509_v48, %v509_v48  ;;  %v511_v51 = vpop.eup %510 }
 0x22c   : > { %248 = vadd.xlane.f32.xlu2 %v247_v49  ;;  %v513_v54 = vpop.eup %512  ;;  %v363_v55 = vpack.c.bf16 %v511_v51, %v511_v51  ;;  %v359_v59 = vsel %vm162_vm0, %v511_v51, 0.0 }
 0x22d   : > { %481 = vmatmul.msk.bf16.vlgmr.msra.gmra.mxu3 %vm162_vm0, %v251_v50  ;;  %v303_v56 = vsel %vm162_vm0, %v513_v54, 0.0  ;;  %v307_v60 = vpack.c.bf16 %v513_v54, %v513_v54 }
 0x22e   : > { %v365_v52 = vpop.permute.xlu0 %364 }
 0x22f   : > { %v370_v53 = vsel %vm199_vm1, %v365_v52, 0 }
 0x230   : > { %379 = vmatpush.bf16.msrb.mxu2 %v370_v53 }
 0x233   : > { %485 = vmatmul.msk.bf16.vlgmr.msrb.gmra.mxu2 %vm162_vm0, %v363_v55 }
 0x234   : > { %304 = vadd.xlane.f32.xlu2 %v303_v56 }
 0x237   : > { %v309_v57 = vpop.permute.xlu1 %308 }
 0x238   : > { %v314_v58 = vsel %vm199_vm1, %v309_v57, 0 }
 0x239   : > { %323 = vmatpush.bf16.msrb.mxu3 %v314_v58 }
 0x23c   : > { %360 = vadd.xlane.f32.xlu2 %v359_v59 }
 0x23d   : > { %483 = vmatmul.msk.bf16.vlgmr.msrb.gmra.mxu3 %vm162_vm0, %v307_v60 }
 0x259   : > { %v190_v12 = vpop.xlane.xlu0 %189 }
 0x29f   : > { %v249_v61 = vpop.xlane.xlu2 %248 }
 0x2a0   : > { %514 = vrcp.f32 %v249_v61 }
 0x2a6   : > { %v515_v0 = vpop.eup %514 }
 0x2a7   : > { %v305_v62 = vpop.xlane.xlu2 %304 }
 0x2af   : > { %v361_v63 = vpop.xlane.xlu2 %360 }
 0x2b0   : > { %516 = vrcp.f32 %v361_v63  ;;  %v269_v1 = vpop.f32.mrf.mxu3 }
 0x2b1   : > { %v273_v2 = vmul.f32 %v515_v0, %v269_v1  ;;  %518 = vrcp.f32 %v305_v62 }
 0x2b2   : > { %520 = vrcp.f32 %v190_v12 }
 0x2b3   : > { %387 = vrot.lane.b32.xlu1 %v273_v2, %s537_s25 }
 0x2b6   : > { %v517_v3 = vpop.eup %516  ;;  %v381_v4 = vpop.f32.mrf.mxu2 }
 0x2b7   : > { %v385_v6 = vmul.f32 %v517_v3, %v381_v4  ;;  %v519_v8 = vpop.eup %518 }
 0x2b8   : > { %v271_v5 = vpop.f32.mrf.mxu3  ;;  %v521_v13 = vpop.eup %520 }
 0x2b9   : > { %v216_v15 = vmul.f32 %v521_v13, %v593_v28 }
 0x2bb   : > { %395 = vrot.lane.b32.xlu1 %v385_v6, %s538_s26 }
 0x2be   : > { %v383_v7 = vpop.f32.mrf.mxu2 }
 0x2c0   : > { %v325_v9 = vpop.f32.mrf.mxu3 }
 0x2c1   : > { %v329_v10 = vmul.f32 %v519_v8, %v325_v9 }
 0x2c3   : > { %391 = vrot.lane.b32.xlu2 %v329_v10, %s539_s27 }
 0x2c8   : > { %v327_v11 = vpop.f32.mrf.mxu3 }
 0x31d   : > { %v392_v17 = vpop.permute.xlu2 %391 }
 0x325   : > { %v388_v14 = vpop.permute.xlu1 %387 }
 0x326   : > { %v398_v16 = vsel %vm162_vm0, %v216_v15, %v388_v14 }
 0x327   : > { %v400_v19 = vsel %vm399_vm2, %v398_v16, %v392_v17 }
 0x32d   : > { %v396_v18 = vpop.permute.xlu1 %395 }
 0x32e   : > { %v402_v20 = vsel %vm401_vm3, %v400_v19, %v396_v18 }
 0x32f   : > { %404 = vst.msk [vmem:[%s155_s30] sm:$0xff] %vm403_vm4, %v402_v20 }
 0x330 PF: > { %s12_s9 = sadd.s32 1, %s528_s9  }
 0x331   : > { %p9_p4 = scmp.ge.s32.totalorder %s12_s9, 4  }
 0x333   :  { %11 = sbr.rel (!%p9_p4) target bundleno = 1 (0x1), region = 61 }

// kernel: decoder_forward.47
= control target key start
LH: loop header
LB: loop body
LE: loop exit
PB: predicated region body
PF: predicated region fallthrough
CT: control target
= control target key end

     0   :  { %vm23_vm0 = vcmask 261120   ;;  %s205_s0 = inlined_call_operand.vmem [shape: f32[8,32], index: 0, kind: input, shape index: {}]   ;;  %s206_s1 = inlined_call_operand.vmem [shape: f32[1,32], index: 1, kind: input, shape index: {}]   ;;  %s207_s2 = inlined_call_operand.vmem [shape: f32[1,32], index: 2, kind: input, shape index: {}]   ;;  %s208_s3 = inlined_call_operand.vmem [shape: f32[32,128], index: 3, kind: input, shape index: {}]   ;;  %s209_s4 = inlined_call_operand.vmem [shape: f32[1,128], index: 4, kind: input, shape index: {}]   ;;  %s210_s5 = inlined_call_operand.hbm [shape: f32[8,128], index: 5, kind: output, shape index: {}]  }
   0x1   :  { %v22_v0 = vld [vmem:[%s205_s0] sm:$0xff] }
   0x2   :  { %v24_v1 = vsel %vm23_vm0, %v22_v0, 0.0 }
   0x3   :  { %25 = vadd.xlane.f32.xlu0 %v24_v1 }
   0x4   :  { %10 = vsyncpa [#allocation3], 0  ;;  %v143_v2 = vmov 32.0   ;;  %v66_v14 = vld [vmem:[%s208_s3 + $0x10] sm:$0xff]  ;;  %v67_v15 = vld [vmem:[%s208_s3 + $0x18] sm:$0xff]  ;;  %s144_s7 = smov [#allocation2]  }
   0x5   :  { %113 = vrcp.f32 %v143_v2  ;;  %v69_v16 = vpack.c.bf16 %v67_v15, %v66_v14  ;;  %v64_v17 = vld [vmem:[%s208_s3] sm:$0xff]  ;;  %v65_v18 = vld [vmem:[%s208_s3 + $0x8] sm:$0xff]  ;;  %s96_s8 = sshll.u32 %s144_s7, 4  ;;  %s97_s8 = int_to_ptr.vmem [resolvable:$true] %s96_s8 }
   0x6   :  { %v68_v19 = vpack.c.bf16 %v65_v18, %v64_v17  ;;  %v110_v29 = vld [vmem:[%s206_s1] ss:$0 sm:$0xff]  ;;  %s98_s1 = sshll.u32 %s210_s5, 4  ;;  %s99_s1 = int_to_ptr.hbm [resolvable:$true] %s98_s1 }
   0x7   :  { %83 = vmatpush.bf16.msra.mxu0 %v69_v16  ;;  %v111_v32 = vld [vmem:[%s207_s2] ss:$0 sm:$0xff] }
   0x8   :  { %v112_v36 = vld [vmem:[%s209_s4] ss:$0 sm:$0xff] }
   0xb   :  { %v114_v3 = vpop.eup %113  ;;  %84 = vmatpush.bf16.msra.mxu0 %v68_v19 }
   0xc   :  { %v28_v4 = vmul.f32 32.0, %v114_v3  ;;  %vm32_vm1 = vweird.f32 %v114_v3 }
   0xe   :  { %v29_v5 = vsub.f32 1.0, %v28_v4 }
  0x10   :  { %v30_v6 = vmul.f32 %v114_v3, %v29_v5 }
  0x12   :  { %v31_v7 = vadd.f32 %v114_v3, %v30_v6 }
  0x14   :  { %v33_v8 = vsel %vm32_vm1, %v114_v3, %v31_v7 }
  0x76   :  { %v26_v9 = vpop.xlane.xlu0 %25 }
  0x77   :  { %v34_v10 = vmul.f32 %v33_v8, %v26_v9 }
  0x79   :  { %v35_v11 = vsub.f32 %v22_v0, %v34_v10 }
  0x7b   :  { %v36_v12 = vmul.f32 %v35_v11, %v35_v11 }
  0x7d   :  { %v37_v13 = vsel %vm23_vm0, %v36_v12, 0.0 }
  0x7e   :  { %38 = vadd.xlane.f32.xlu0 %v37_v13 }
  0xf1   :  { %v39_v20 = vpop.xlane.xlu0 %38 }
  0xf2   :  { %v40_v21 = vmul.f32 %v39_v20, %v33_v8 }
  0xf4   :  { %v41_v22 = vadd.f32 1e-05, %v40_v21 }
  0xf6   :  { %115 = vrsqrt.f32 %v41_v22  ;;  %vm48_vm3 = vweird.f32 %v41_v22 }
  0xfc   :  { %v116_v23 = vpop.eup %115 }
  0xfd   :  { %v43_v24 = vmul.f32 %v116_v23, %v41_v22  ;;  %vm49_vm2 = vweird.f32 %v116_v23 }
  0xfe   :  { %vm50_vm4 = vmor %vm48_vm3, %vm49_vm2 }
  0xff   :  { %v44_v25 = vmul.f32 %v116_v23, %v43_v24 }
 0x101   :  { %v45_v26 = vmul.f32 0.5, %v44_v25 }
 0x103   :  { %v46_v27 = vsub.f32 1.5, %v45_v26 }
 0x105   :  { %v47_v28 = vmul.f32 %v116_v23, %v46_v27 }
 0x107   :  { %v51_v30 = vsel %vm50_vm4, %v116_v23, %v47_v28 }
 0x108   :  { %v52_v31 = vmul.f32 %v51_v30, %v35_v11 }
 0x10a   :  { %v57_v33 = vmul.f32 %v110_v29, %v52_v31 }
 0x10c   :  { %v62_v34 = vadd.f32 %v111_v32, %v57_v33 }
 0x10e   :  { %v63_v35 = vpack.c.bf16 %v62_v34, %v62_v34 }
 0x110   :  { %107 = vmatmul.msk.bf16.vlgmr.msra.gmra.mxu0 %vm23_vm0, %v63_v35 }
 0x18d   :  { %v86_v37 = vpop.f32.mrf.mxu0 }
 0x18e   :  { %v87_v38 = vadd.f32 %v112_v36, %v86_v37 }
 0x190   :  { %90 = vst [vmem:[#allocation2] sm:$0xff] %v87_v38 }
 0x191   :  { %101 = dma.vmem_to_hbm [thread:$0]  %s97_s8, 128, %s99_s1, [#allocation3]  }
 0x195   :  { %v88_v39 = vpop.f32.mrf.mxu0 }
 0x196   :  { %141 = dma.done.wait [#allocation3], 128  }
 0x197   :  { %142 = vsyncadd [#allocation3], 4294967168 }
 0x198   :  { %106 = vsyncpa [#allocation3], 1 }

</bundles_post_ra>
